<compile_context>
chip_gen: v5e
topology: v5e:2x2
jax: 0.10.0
libtpu: 0.0.40
codegen_flags: <defaults>
</compile_context>

<pallas_src>
import functools
import math

import jax
import jax.numpy as jnp
from jax.experimental import pallas as pl
from jax.experimental.pallas import tpu as pltpu


def _make_encoder_kernel(num_layers, seq_len, batch):
    """Builds the fused multi-layer LSTM forward kernel.

    Kernel ref order (positional):
      refs[0]                       x_ref      (T*B, F)    flattened time-major input
      refs[1+3l : 4+3l]             W_ih^T (F_l, 4H), W_hh^T (H, 4H), bias (1, 4H)
      refs[1+3L], refs[2+3L]        hidden (L, B, H), cell (L, B, H)   outputs
      refs[3+3L]                    gproj scratch (T*B, 4H)  hoisted gate projections
      refs[4+3L]                    seq   scratch (T*B, H)   inter-layer hidden sequence
    """

    def kernel(*refs):
        x_ref = refs[0]
        w_refs = refs[1:1 + 3 * num_layers]
        hidden_ref = refs[1 + 3 * num_layers]
        cell_ref = refs[2 + 3 * num_layers]
        gproj_scr = refs[3 + 3 * num_layers]
        seq_scr = refs[4 + 3 * num_layers]

        B = batch
        H = cell_ref.shape[-1]

        layer_in = x_ref[...]                      # (T*B, F_in), VMEM-resident
        for layer in range(num_layers):
            wih_ref, whh_ref, b_ref = w_refs[3 * layer:3 * layer + 3]
            last = layer == num_layers - 1

            # Hoisted input projection (+ fused bias) for ALL timesteps: one MXU call
            # per layer; removes a matmul + bias add from the serial recurrence.
            gproj_scr[...] = (
                jnp.dot(layer_in, wih_ref[...], preferred_element_type=jnp.float32)
                + b_ref[...]
            )

            h = jnp.zeros((B, H), jnp.float32)
            c = jnp.zeros((B, H), jnp.float32)

            # T is small and static -> fully unrolled time loop; only the (B,H)x(H,4H)
            # recurrent matmul + gate math sit on the critical path.
            for t in range(seq_len):
                r = t * B                                        # tile-aligned (B=8k)
                gates = gproj_scr[r:r + B, :] + jnp.dot(
                    h, whh_ref[...], preferred_element_type=jnp.float32)  # (B, 4H)
                # Two full-vreg EUP passes instead of four narrow ones.
                sg = jax.nn.sigmoid(gates)
                tg = jnp.tanh(gates)
                c = sg[:, H:2 * H] * c + sg[:, :H] * tg[:, 2 * H:3 * H]
                h = sg[:, 3 * H:] * jnp.tanh(c)
                if not last:
                    seq_scr[r:r + B, :] = h        # inter-layer sequence stays in VMEM

            hidden_ref[layer] = h
            cell_ref[layer] = c
            if not last:
                layer_in = seq_scr[...]            # feed next layer, no HBM bounce

    return kernel


def lstm_encoder_forward(x_tbf, kernel_params, hidden_size, num_layers):
    """x_tbf: (T, B, F) float32 time-major input.

    kernel_params: per layer (W_ih^T (F_l,4H), W_hh^T (H,4H), bias (1,4H) = b_ih+b_hh).
    Returns (hidden, cell), each (num_layers, B, H).
    """
    T, B, F = x_tbf.shape
    H, L = hidden_size, num_layers

    x_flat = x_tbf.reshape(T * B, F)

    vmem = pl.BlockSpec(memory_space=pltpu.MemorySpace.VMEM)
    args = [x_flat]
    for wih_t, whh_t, bias in kernel_params:
        args += [wih_t, whh_t, bias]

    # TODO(synk): if T/B/H are scaled up, tile T (cap the resident (T*B,4H) scratch
    # against v7x's 64 MiB VMEM) and split the batch across TensorCores; at these
    # shapes the whole problem (<100 KB) trivially fits in VMEM on every generation.
    hidden, cell = pl.pallas_call(
        _make_encoder_kernel(L, T, B),
        out_shape=(
            jax.ShapeDtypeStruct((L, B, H), jnp.float32),
            jax.ShapeDtypeStruct((L, B, H), jnp.float32),
        ),
        in_specs=[vmem] * len(args),
        out_specs=(vmem, vmem),
        scratch_shapes=[
            pltpu.VMEM((T * B, 4 * H), jnp.float32),   # hoisted gate projections
            pltpu.VMEM((T * B, H), jnp.float32),       # inter-layer hidden sequence
        ],
    )(*args)
    return hidden, cell


class LSTMEncoderPallas:
    """JAX/Pallas replica of the PyTorch LSTMEncoder forward pass (eval mode)."""

    def __init__(self, n_features, hidden_size=32, num_layers=2, num_nodes=8,
                 key=jax.random.PRNGKey(0)):
        self.n_features = n_features
        self.hidden_size = hidden_size
        self.num_layers = num_layers
        self.num_nodes = num_nodes

        # Deterministic init matching PyTorch's U(-1/sqrt(H), 1/sqrt(H)) scheme.
        bound = 1.0 / math.sqrt(hidden_size)
        self.params = []          # PyTorch-layout params (used by the reference check)
        self.kernel_params = []   # (W_ih^T, W_hh^T, b_ih + b_hh) consumed by the kernel
        for layer in range(num_layers):
            in_dim = n_features if layer == 0 else hidden_size
            key, k1, k2, k3, k4 = jax.random.split(key, 5)
            w_ih = jax.random.uniform(k1, (4 * hidden_size, in_dim),
                                      jnp.float32, -bound, bound)
            w_hh = jax.random.uniform(k2, (4 * hidden_size, hidden_size),
                                      jnp.float32, -bound, bound)
            b_ih = jax.random.uniform(k3, (4 * hidden_size,),
                                      jnp.float32, -bound, bound)
            b_hh = jax.random.uniform(k4, (4 * hidden_size,),
                                      jnp.float32, -bound, bound)
            self.params.append((w_ih, w_hh, b_ih, b_hh))
            self.kernel_params.append(
                (w_ih.T, w_hh.T, (b_ih + b_hh).reshape(1, 4 * hidden_size)))

    @functools.partial(jax.jit, static_argnums=0)
    def __call__(self, x):
        # x: (batch_sequence, num_nodes, n_features).  PyTorch permutes to batch_first
        # (num_nodes, batch_sequence, n_features); the original layout is exactly the
        # time-major (seq, batch, feat) the kernel wants.
        x = x.astype(jnp.float32)
        return lstm_encoder_forward(x, self.kernel_params,
                                    self.hidden_size, self.num_layers)


def _reference_lstm(x, params, hidden_size, num_layers):
    """Pure-JAX reference for a correctness check (matches PyTorch eval LSTM)."""
    H = hidden_size
    layer_in = x.astype(jnp.float32)      # (T, B, F)
    hs, cs = [], []
    for layer in range(num_layers):
        w_ih, w_hh, b_ih, b_hh = params[layer]
        T, B, _ = layer_in.shape
        h = jnp.zeros((B, H), jnp.float32)
        c = jnp.zeros((B, H), jnp.float32)
        outs = []
        for t in range(T):
            g = layer_in[t] @ w_ih.T + h @ w_hh.T + b_ih + b_hh
            i = jax.nn.sigmoid(g[:, 0 * H:1 * H])
            f = jax.nn.sigmoid(g[:, 1 * H:2 * H])
            gg = jnp.tanh(g[:, 2 * H:3 * H])
            o = jax.nn.sigmoid(g[:, 3 * H:4 * H])
            c = f * c + i * gg
            h = o * jnp.tanh(c)
            outs.append(h)
        layer_in = jnp.stack(outs, axis=0)
        hs.append(h)
        cs.append(c)
    return jnp.stack(hs, 0), jnp.stack(cs, 0)


if __name__ == "__main__":
    # Small shapes: batch_sequence (=seq) = 8, num_nodes (=batch) = 8, n_features = 16,
    # hidden_size = 32, num_layers = 2.
    SEQ, NODES, FEAT, HIDDEN, LAYERS = 8, 8, 16, 32, 2

    key = jax.random.PRNGKey(0)
    kx, kp = jax.random.split(key)
    x = jax.random.normal(kx, (SEQ, NODES, FEAT), jnp.float32)

    enc = LSTMEncoderPallas(n_features=FEAT, hidden_size=HIDDEN,
                            num_layers=LAYERS, num_nodes=NODES, key=kp)

    hidden, cell = enc(x)
    jax.block_until_ready((hidden, cell))

    assert hidden.shape == (LAYERS, NODES, HIDDEN)
    assert cell.shape == (LAYERS, NODES, HIDDEN)

    # Sanity-check against a pure-JAX reference.
    h_ref, c_ref = _reference_lstm(x, enc.params, HIDDEN, LAYERS)
    assert jnp.allclose(hidden, h_ref, atol=1e-5, rtol=1e-5)
    assert jnp.allclose(cell, c_ref, atol=1e-5, rtol=1e-5)

    print("KERNEL_OK")
</pallas_src>

<mosaic_0001>
module attributes {stable_mosaic.version = 11 : i64} {
  func.func @kernel(%arg0: memref<64x16xf32, #tpu.memory_space<vmem>>, %arg1: memref<16x128xf32, #tpu.memory_space<vmem>>, %arg2: memref<32x128xf32, #tpu.memory_space<vmem>>, %arg3: memref<1x128xf32, #tpu.memory_space<vmem>>, %arg4: memref<32x128xf32, #tpu.memory_space<vmem>>, %arg5: memref<32x128xf32, #tpu.memory_space<vmem>>, %arg6: memref<1x128xf32, #tpu.memory_space<vmem>>, %arg7: memref<2x8x32xf32, #tpu.memory_space<vmem>>, %arg8: memref<2x8x32xf32, #tpu.memory_space<vmem>>, %arg9: memref<64x128xf32, #tpu.memory_space<vmem>>, %arg10: memref<64x32xf32, #tpu.memory_space<vmem>>) attributes {dimension_semantics = [], scalar_prefetch = 0 : i64, scratch_operands = 2 : i64, tpu.core_type = #tpu.core_type<tc>} {
    %c0 = arith.constant 0 : index
    %c0_0 = arith.constant 0 : index
    %0 = vector.load %arg0[%c0, %c0_0] : memref<64x16xf32, #tpu.memory_space<vmem>>, vector<64x16xf32>
    %c0_1 = arith.constant 0 : index
    %c0_2 = arith.constant 0 : index
    %1 = vector.load %arg1[%c0_1, %c0_2] : memref<16x128xf32, #tpu.memory_space<vmem>>, vector<16x128xf32>
    %cst = arith.constant dense<0.000000e+00> : vector<64x128xf32>
    %2 = tpu.matmul %0, %1, %cst {dimension_numbers = #tpu.dot_dimension_numbers<[1], [0], [0], [1], [0, 0, 1, 1], [], []>} : vector<64x16xf32>, vector<16x128xf32>, vector<64x128xf32> -> vector<64x128xf32>
    %c0_3 = arith.constant 0 : index
    %c0_4 = arith.constant 0 : index
    %3 = vector.load %arg3[%c0_3, %c0_4] : memref<1x128xf32, #tpu.memory_space<vmem>>, vector<1x128xf32>
    %4 = vector.broadcast %3 : vector<1x128xf32> to vector<64x128xf32>
    %5 = arith.addf %2, %4 : vector<64x128xf32>
    %c0_5 = arith.constant 0 : index
    %c0_6 = arith.constant 0 : index
    %6 = vector.load %arg9[%c0_5, %c0_6] : memref<64x128xf32, #tpu.memory_space<vmem>>, vector<64x128xf32>
    tpu.vector_store %arg9[%c0_5, %c0_6], %5 {strides = array<i32>} : memref<64x128xf32, #tpu.memory_space<vmem>>, vector<64x128xf32>,
    %cst_7 = arith.constant 0.000000e+00 : f32
    %7 = vector.broadcast %cst_7 : f32 to vector<8x32xf32>
    %cst_8 = arith.constant 0.000000e+00 : f32
    %8 = vector.broadcast %cst_8 : f32 to vector<8x32xf32>
    %c0_9 = arith.constant 0 : index
    %c0_10 = arith.constant 0 : index
    %9 = vector.load %arg9[%c0_9, %c0_10] : memref<64x128xf32, #tpu.memory_space<vmem>>, vector<8x128xf32>
    %c0_11 = arith.constant 0 : index
    %c0_12 = arith.constant 0 : index
    %10 = vector.load %arg2[%c0_11, %c0_12] : memref<32x128xf32, #tpu.memory_space<vmem>>, vector<32x128xf32>
    %cst_13 = arith.constant dense<0.000000e+00> : vector<8x128xf32>
    %11 = tpu.matmul %7, %10, %cst_13 {dimension_numbers = #tpu.dot_dimension_numbers<[1], [0], [0], [1], [0, 0, 1, 1], [], []>} : vector<8x32xf32>, vector<32x128xf32>, vector<8x128xf32> -> vector<8x128xf32>
    %12 = arith.addf %9, %11 : vector<8x128xf32>
    %13 = arith.negf %12 : vector<8x128xf32>
    %14 = math.exp %13 : vector<8x128xf32>
    %cst_14 = arith.constant 1.000000e+00 : f32
    %15 = vector.broadcast %cst_14 : f32 to vector<8x128xf32>
    %16 = arith.addf %15, %14 : vector<8x128xf32>
    %17 = arith.divf %15, %16 : vector<8x128xf32>
    %18 = math.tanh %12 : vector<8x128xf32>
    %19 = vector.extract_strided_slice %17 {offsets = [0, 32], sizes = [8, 32], strides = [1, 1]} : vector<8x128xf32> to vector<8x32xf32>
    %20 = arith.mulf %19, %8 : vector<8x32xf32>
    %21 = vector.extract_strided_slice %17 {offsets = [0, 0], sizes = [8, 32], strides = [1, 1]} : vector<8x128xf32> to vector<8x32xf32>
    %22 = vector.extract_strided_slice %18 {offsets = [0, 64], sizes = [8, 32], strides = [1, 1]} : vector<8x128xf32> to vector<8x32xf32>
    %23 = arith.mulf %21, %22 : vector<8x32xf32>
    %24 = arith.addf %20, %23 : vector<8x32xf32>
    %25 = vector.extract_strided_slice %17 {offsets = [0, 96], sizes = [8, 32], strides = [1, 1]} : vector<8x128xf32> to vector<8x32xf32>
    %26 = math.tanh %24 : vector<8x32xf32>
    %27 = arith.mulf %25, %26 : vector<8x32xf32>
    %c0_15 = arith.constant 0 : index
    %c0_16 = arith.constant 0 : index
    %28 = vector.load %arg10[%c0_15, %c0_16] : memref<64x32xf32, #tpu.memory_space<vmem>>, vector<8x32xf32>
    tpu.vector_store %arg10[%c0_15, %c0_16], %27 {strides = array<i32>} : memref<64x32xf32, #tpu.memory_space<vmem>>, vector<8x32xf32>,
    %c8 = arith.constant 8 : index
    %c0_17 = arith.constant 0 : index
    %29 = vector.load %arg9[%c8, %c0_17] : memref<64x128xf32, #tpu.memory_space<vmem>>, vector<8x128xf32>
    %c0_18 = arith.constant 0 : index
    %c0_19 = arith.constant 0 : index
    %30 = vector.load %arg2[%c0_18, %c0_19] : memref<32x128xf32, #tpu.memory_space<vmem>>, vector<32x128xf32>
    %cst_20 = arith.constant dense<0.000000e+00> : vector<8x128xf32>
    %31 = tpu.matmul %27, %30, %cst_20 {dimension_numbers = #tpu.dot_dimension_numbers<[1], [0], [0], [1], [0, 0, 1, 1], [], []>} : vector<8x32xf32>, vector<32x128xf32>, vector<8x128xf32> -> vector<8x128xf32>
    %32 = arith.addf %29, %31 : vector<8x128xf32>
    %33 = arith.negf %32 : vector<8x128xf32>
    %34 = math.exp %33 : vector<8x128xf32>
    %cst_21 = arith.constant 1.000000e+00 : f32
    %35 = vector.broadcast %cst_21 : f32 to vector<8x128xf32>
    %36 = arith.addf %35, %34 : vector<8x128xf32>
    %37 = arith.divf %35, %36 : vector<8x128xf32>
    %38 = math.tanh %32 : vector<8x128xf32>
    %39 = vector.extract_strided_slice %37 {offsets = [0, 32], sizes = [8, 32], strides = [1, 1]} : vector<8x128xf32> to vector<8x32xf32>
    %40 = arith.mulf %39, %24 : vector<8x32xf32>
    %41 = vector.extract_strided_slice %37 {offsets = [0, 0], sizes = [8, 32], strides = [1, 1]} : vector<8x128xf32> to vector<8x32xf32>
    %42 = vector.extract_strided_slice %38 {offsets = [0, 64], sizes = [8, 32], strides = [1, 1]} : vector<8x128xf32> to vector<8x32xf32>
    %43 = arith.mulf %41, %42 : vector<8x32xf32>
    %44 = arith.addf %40, %43 : vector<8x32xf32>
    %45 = vector.extract_strided_slice %37 {offsets = [0, 96], sizes = [8, 32], strides = [1, 1]} : vector<8x128xf32> to vector<8x32xf32>
    %46 = math.tanh %44 : vector<8x32xf32>
    %47 = arith.mulf %45, %46 : vector<8x32xf32>
    %c8_22 = arith.constant 8 : index
    %c0_23 = arith.constant 0 : index
    %48 = vector.load %arg10[%c8_22, %c0_23] : memref<64x32xf32, #tpu.memory_space<vmem>>, vector<8x32xf32>
    tpu.vector_store %arg10[%c8_22, %c0_23], %47 {strides = array<i32>} : memref<64x32xf32, #tpu.memory_space<vmem>>, vector<8x32xf32>,
    %c16 = arith.constant 16 : index
    %c0_24 = arith.constant 0 : index
    %49 = vector.load %arg9[%c16, %c0_24] : memref<64x128xf32, #tpu.memory_space<vmem>>, vector<8x128xf32>
    %c0_25 = arith.constant 0 : index
    %c0_26 = arith.constant 0 : index
    %50 = vector.load %arg2[%c0_25, %c0_26] : memref<32x128xf32, #tpu.memory_space<vmem>>, vector<32x128xf32>
    %cst_27 = arith.constant dense<0.000000e+00> : vector<8x128xf32>
    %51 = tpu.matmul %47, %50, %cst_27 {dimension_numbers = #tpu.dot_dimension_numbers<[1], [0], [0], [1], [0, 0, 1, 1], [], []>} : vector<8x32xf32>, vector<32x128xf32>, vector<8x128xf32> -> vector<8x128xf32>
    %52 = arith.addf %49, %51 : vector<8x128xf32>
    %53 = arith.negf %52 : vector<8x128xf32>
    %54 = math.exp %53 : vector<8x128xf32>
    %cst_28 = arith.constant 1.000000e+00 : f32
    %55 = vector.broadcast %cst_28 : f32 to vector<8x128xf32>
    %56 = arith.addf %55, %54 : vector<8x128xf32>
    %57 = arith.divf %55, %56 : vector<8x128xf32>
    %58 = math.tanh %52 : vector<8x128xf32>
    %59 = vector.extract_strided_slice %57 {offsets = [0, 32], sizes = [8, 32], strides = [1, 1]} : vector<8x128xf32> to vector<8x32xf32>
    %60 = arith.mulf %59, %44 : vector<8x32xf32>
    %61 = vector.extract_strided_slice %57 {offsets = [0, 0], sizes = [8, 32], strides = [1, 1]} : vector<8x128xf32> to vector<8x32xf32>
    %62 = vector.extract_strided_slice %58 {offsets = [0, 64], sizes = [8, 32], strides = [1, 1]} : vector<8x128xf32> to vector<8x32xf32>
    %63 = arith.mulf %61, %62 : vector<8x32xf32>
    %64 = arith.addf %60, %63 : vector<8x32xf32>
    %65 = vector.extract_strided_slice %57 {offsets = [0, 96], sizes = [8, 32], strides = [1, 1]} : vector<8x128xf32> to vector<8x32xf32>
    %66 = math.tanh %64 : vector<8x32xf32>
    %67 = arith.mulf %65, %66 : vector<8x32xf32>
    %c16_29 = arith.constant 16 : index
    %c0_30 = arith.constant 0 : index
    %68 = vector.load %arg10[%c16_29, %c0_30] : memref<64x32xf32, #tpu.memory_space<vmem>>, vector<8x32xf32>
    tpu.vector_store %arg10[%c16_29, %c0_30], %67 {strides = array<i32>} : memref<64x32xf32, #tpu.memory_space<vmem>>, vector<8x32xf32>,
    %c24 = arith.constant 24 : index
    %c0_31 = arith.constant 0 : index
    %69 = vector.load %arg9[%c24, %c0_31] : memref<64x128xf32, #tpu.memory_space<vmem>>, vector<8x128xf32>
    %c0_32 = arith.constant 0 : index
    %c0_33 = arith.constant 0 : index
    %70 = vector.load %arg2[%c0_32, %c0_33] : memref<32x128xf32, #tpu.memory_space<vmem>>, vector<32x128xf32>
    %cst_34 = arith.constant dense<0.000000e+00> : vector<8x128xf32>
    %71 = tpu.matmul %67, %70, %cst_34 {dimension_numbers = #tpu.dot_dimension_numbers<[1], [0], [0], [1], [0, 0, 1, 1], [], []>} : vector<8x32xf32>, vector<32x128xf32>, vector<8x128xf32> -> vector<8x128xf32>
    %72 = arith.addf %69, %71 : vector<8x128xf32>
    %73 = arith.negf %72 : vector<8x128xf32>
    %74 = math.exp %73 : vector<8x128xf32>
    %cst_35 = arith.constant 1.000000e+00 : f32
    %75 = vector.broadcast %cst_35 : f32 to vector<8x128xf32>
    %76 = arith.addf %75, %74 : vector<8x128xf32>
    %77 = arith.divf %75, %76 : vector<8x128xf32>
    %78 = math.tanh %72 : vector<8x128xf32>
    %79 = vector.extract_strided_slice %77 {offsets = [0, 32], sizes = [8, 32], strides = [1, 1]} : vector<8x128xf32> to vector<8x32xf32>
    %80 = arith.mulf %79, %64 : vector<8x32xf32>
    %81 = vector.extract_strided_slice %77 {offsets = [0, 0], sizes = [8, 32], strides = [1, 1]} : vector<8x128xf32> to vector<8x32xf32>
    %82 = vector.extract_strided_slice %78 {offsets = [0, 64], sizes = [8, 32], strides = [1, 1]} : vector<8x128xf32> to vector<8x32xf32>
    %83 = arith.mulf %81, %82 : vector<8x32xf32>
    %84 = arith.addf %80, %83 : vector<8x32xf32>
    %85 = vector.extract_strided_slice %77 {offsets = [0, 96], sizes = [8, 32], strides = [1, 1]} : vector<8x128xf32> to vector<8x32xf32>
    %86 = math.tanh %84 : vector<8x32xf32>
    %87 = arith.mulf %85, %86 : vector<8x32xf32>
    %c24_36 = arith.constant 24 : index
    %c0_37 = arith.constant 0 : index
    %88 = vector.load %arg10[%c24_36, %c0_37] : memref<64x32xf32, #tpu.memory_space<vmem>>, vector<8x32xf32>
    tpu.vector_store %arg10[%c24_36, %c0_37], %87 {strides = array<i32>} : memref<64x32xf32, #tpu.memory_space<vmem>>, vector<8x32xf32>,
    %c32 = arith.constant 32 : index
    %c0_38 = arith.constant 0 : index
    %89 = vector.load %arg9[%c32, %c0_38] : memref<64x128xf32, #tpu.memory_space<vmem>>, vector<8x128xf32>
    %c0_39 = arith.constant 0 : index
    %c0_40 = arith.constant 0 : index
    %90 = vector.load %arg2[%c0_39, %c0_40] : memref<32x128xf32, #tpu.memory_space<vmem>>, vector<32x128xf32>
    %cst_41 = arith.constant dense<0.000000e+00> : vector<8x128xf32>
    %91 = tpu.matmul %87, %90, %cst_41 {dimension_numbers = #tpu.dot_dimension_numbers<[1], [0], [0], [1], [0, 0, 1, 1], [], []>} : vector<8x32xf32>, vector<32x128xf32>, vector<8x128xf32> -> vector<8x128xf32>
    %92 = arith.addf %89, %91 : vector<8x128xf32>
    %93 = arith.negf %92 : vector<8x128xf32>
    %94 = math.exp %93 : vector<8x128xf32>
    %cst_42 = arith.constant 1.000000e+00 : f32
    %95 = vector.broadcast %cst_42 : f32 to vector<8x128xf32>
    %96 = arith.addf %95, %94 : vector<8x128xf32>
    %97 = arith.divf %95, %96 : vector<8x128xf32>
    %98 = math.tanh %92 : vector<8x128xf32>
    %99 = vector.extract_strided_slice %97 {offsets = [0, 32], sizes = [8, 32], strides = [1, 1]} : vector<8x128xf32> to vector<8x32xf32>
    %100 = arith.mulf %99, %84 : vector<8x32xf32>
    %101 = vector.extract_strided_slice %97 {offsets = [0, 0], sizes = [8, 32], strides = [1, 1]} : vector<8x128xf32> to vector<8x32xf32>
    %102 = vector.extract_strided_slice %98 {offsets = [0, 64], sizes = [8, 32], strides = [1, 1]} : vector<8x128xf32> to vector<8x32xf32>
    %103 = arith.mulf %101, %102 : vector<8x32xf32>
    %104 = arith.addf %100, %103 : vector<8x32xf32>
    %105 = vector.extract_strided_slice %97 {offsets = [0, 96], sizes = [8, 32], strides = [1, 1]} : vector<8x128xf32> to vector<8x32xf32>
    %106 = math.tanh %104 : vector<8x32xf32>
    %107 = arith.mulf %105, %106 : vector<8x32xf32>
    %c32_43 = arith.constant 32 : index
    %c0_44 = arith.constant 0 : index
    %108 = vector.load %arg10[%c32_43, %c0_44] : memref<64x32xf32, #tpu.memory_space<vmem>>, vector<8x32xf32>
    tpu.vector_store %arg10[%c32_43, %c0_44], %107 {strides = array<i32>} : memref<64x32xf32, #tpu.memory_space<vmem>>, vector<8x32xf32>,
    %c40 = arith.constant 40 : index
    %c0_45 = arith.constant 0 : index
    %109 = vector.load %arg9[%c40, %c0_45] : memref<64x128xf32, #tpu.memory_space<vmem>>, vector<8x128xf32>
    %c0_46 = arith.constant 0 : index
    %c0_47 = arith.constant 0 : index
    %110 = vector.load %arg2[%c0_46, %c0_47] : memref<32x128xf32, #tpu.memory_space<vmem>>, vector<32x128xf32>
    %cst_48 = arith.constant dense<0.000000e+00> : vector<8x128xf32>
    %111 = tpu.matmul %107, %110, %cst_48 {dimension_numbers = #tpu.dot_dimension_numbers<[1], [0], [0], [1], [0, 0, 1, 1], [], []>} : vector<8x32xf32>, vector<32x128xf32>, vector<8x128xf32> -> vector<8x128xf32>
    %112 = arith.addf %109, %111 : vector<8x128xf32>
    %113 = arith.negf %112 : vector<8x128xf32>
    %114 = math.exp %113 : vector<8x128xf32>
    %cst_49 = arith.constant 1.000000e+00 : f32
    %115 = vector.broadcast %cst_49 : f32 to vector<8x128xf32>
    %116 = arith.addf %115, %114 : vector<8x128xf32>
    %117 = arith.divf %115, %116 : vector<8x128xf32>
    %118 = math.tanh %112 : vector<8x128xf32>
    %119 = vector.extract_strided_slice %117 {offsets = [0, 32], sizes = [8, 32], strides = [1, 1]} : vector<8x128xf32> to vector<8x32xf32>
    %120 = arith.mulf %119, %104 : vector<8x32xf32>
    %121 = vector.extract_strided_slice %117 {offsets = [0, 0], sizes = [8, 32], strides = [1, 1]} : vector<8x128xf32> to vector<8x32xf32>
    %122 = vector.extract_strided_slice %118 {offsets = [0, 64], sizes = [8, 32], strides = [1, 1]} : vector<8x128xf32> to vector<8x32xf32>
    %123 = arith.mulf %121, %122 : vector<8x32xf32>
    %124 = arith.addf %120, %123 : vector<8x32xf32>
    %125 = vector.extract_strided_slice %117 {offsets = [0, 96], sizes = [8, 32], strides = [1, 1]} : vector<8x128xf32> to vector<8x32xf32>
    %126 = math.tanh %124 : vector<8x32xf32>
    %127 = arith.mulf %125, %126 : vector<8x32xf32>
    %c40_50 = arith.constant 40 : index
    %c0_51 = arith.constant 0 : index
    %128 = vector.load %arg10[%c40_50, %c0_51] : memref<64x32xf32, #tpu.memory_space<vmem>>, vector<8x32xf32>
    tpu.vector_store %arg10[%c40_50, %c0_51], %127 {strides = array<i32>} : memref<64x32xf32, #tpu.memory_space<vmem>>, vector<8x32xf32>,
    %c48 = arith.constant 48 : index
    %c0_52 = arith.constant 0 : index
    %129 = vector.load %arg9[%c48, %c0_52] : memref<64x128xf32, #tpu.memory_space<vmem>>, vector<8x128xf32>
    %c0_53 = arith.constant 0 : index
    %c0_54 = arith.constant 0 : index
    %130 = vector.load %arg2[%c0_53, %c0_54] : memref<32x128xf32, #tpu.memory_space<vmem>>, vector<32x128xf32>
    %cst_55 = arith.constant dense<0.000000e+00> : vector<8x128xf32>
    %131 = tpu.matmul %127, %130, %cst_55 {dimension_numbers = #tpu.dot_dimension_numbers<[1], [0], [0], [1], [0, 0, 1, 1], [], []>} : vector<8x32xf32>, vector<32x128xf32>, vector<8x128xf32> -> vector<8x128xf32>
    %132 = arith.addf %129, %131 : vector<8x128xf32>
    %133 = arith.negf %132 : vector<8x128xf32>
    %134 = math.exp %133 : vector<8x128xf32>
    %cst_56 = arith.constant 1.000000e+00 : f32
    %135 = vector.broadcast %cst_56 : f32 to vector<8x128xf32>
    %136 = arith.addf %135, %134 : vector<8x128xf32>
    %137 = arith.divf %135, %136 : vector<8x128xf32>
    %138 = math.tanh %132 : vector<8x128xf32>
    %139 = vector.extract_strided_slice %137 {offsets = [0, 32], sizes = [8, 32], strides = [1, 1]} : vector<8x128xf32> to vector<8x32xf32>
    %140 = arith.mulf %139, %124 : vector<8x32xf32>
    %141 = vector.extract_strided_slice %137 {offsets = [0, 0], sizes = [8, 32], strides = [1, 1]} : vector<8x128xf32> to vector<8x32xf32>
    %142 = vector.extract_strided_slice %138 {offsets = [0, 64], sizes = [8, 32], strides = [1, 1]} : vector<8x128xf32> to vector<8x32xf32>
    %143 = arith.mulf %141, %142 : vector<8x32xf32>
    %144 = arith.addf %140, %143 : vector<8x32xf32>
    %145 = vector.extract_strided_slice %137 {offsets = [0, 96], sizes = [8, 32], strides = [1, 1]} : vector<8x128xf32> to vector<8x32xf32>
    %146 = math.tanh %144 : vector<8x32xf32>
    %147 = arith.mulf %145, %146 : vector<8x32xf32>
    %c48_57 = arith.constant 48 : index
    %c0_58 = arith.constant 0 : index
    %148 = vector.load %arg10[%c48_57, %c0_58] : memref<64x32xf32, #tpu.memory_space<vmem>>, vector<8x32xf32>
    tpu.vector_store %arg10[%c48_57, %c0_58], %147 {strides = array<i32>} : memref<64x32xf32, #tpu.memory_space<vmem>>, vector<8x32xf32>,
    %c56 = arith.constant 56 : index
    %c0_59 = arith.constant 0 : index
    %149 = vector.load %arg9[%c56, %c0_59] : memref<64x128xf32, #tpu.memory_space<vmem>>, vector<8x128xf32>
    %c0_60 = arith.constant 0 : index
    %c0_61 = arith.constant 0 : index
    %150 = vector.load %arg2[%c0_60, %c0_61] : memref<32x128xf32, #tpu.memory_space<vmem>>, vector<32x128xf32>
    %cst_62 = arith.constant dense<0.000000e+00> : vector<8x128xf32>
    %151 = tpu.matmul %147, %150, %cst_62 {dimension_numbers = #tpu.dot_dimension_numbers<[1], [0], [0], [1], [0, 0, 1, 1], [], []>} : vector<8x32xf32>, vector<32x128xf32>, vector<8x128xf32> -> vector<8x128xf32>
    %152 = arith.addf %149, %151 : vector<8x128xf32>
    %153 = arith.negf %152 : vector<8x128xf32>
    %154 = math.exp %153 : vector<8x128xf32>
    %cst_63 = arith.constant 1.000000e+00 : f32
    %155 = vector.broadcast %cst_63 : f32 to vector<8x128xf32>
    %156 = arith.addf %155, %154 : vector<8x128xf32>
    %157 = arith.divf %155, %156 : vector<8x128xf32>
    %158 = math.tanh %152 : vector<8x128xf32>
    %159 = vector.extract_strided_slice %157 {offsets = [0, 32], sizes = [8, 32], strides = [1, 1]} : vector<8x128xf32> to vector<8x32xf32>
    %160 = arith.mulf %159, %144 : vector<8x32xf32>
    %161 = vector.extract_strided_slice %157 {offsets = [0, 0], sizes = [8, 32], strides = [1, 1]} : vector<8x128xf32> to vector<8x32xf32>
    %162 = vector.extract_strided_slice %158 {offsets = [0, 64], sizes = [8, 32], strides = [1, 1]} : vector<8x128xf32> to vector<8x32xf32>
    %163 = arith.mulf %161, %162 : vector<8x32xf32>
    %164 = arith.addf %160, %163 : vector<8x32xf32>
    %165 = vector.extract_strided_slice %157 {offsets = [0, 96], sizes = [8, 32], strides = [1, 1]} : vector<8x128xf32> to vector<8x32xf32>
    %166 = math.tanh %164 : vector<8x32xf32>
    %167 = arith.mulf %165, %166 : vector<8x32xf32>
    %c56_64 = arith.constant 56 : index
    %c0_65 = arith.constant 0 : index
    %168 = vector.load %arg10[%c56_64, %c0_65] : memref<64x32xf32, #tpu.memory_space<vmem>>, vector<8x32xf32>
    tpu.vector_store %arg10[%c56_64, %c0_65], %167 {strides = array<i32>} : memref<64x32xf32, #tpu.memory_space<vmem>>, vector<8x32xf32>,
    %c0_66 = arith.constant 0 : index
    %c0_67 = arith.constant 0 : index
    %c0_68 = arith.constant 0 : index
    %169 = vector.load %arg7[%c0_66, %c0_67, %c0_68] : memref<2x8x32xf32, #tpu.memory_space<vmem>>, vector<1x8x32xf32>
    %170 = vector.shape_cast %169 : vector<1x8x32xf32> to vector<8x32xf32>
    %171 = vector.shape_cast %167 : vector<8x32xf32> to vector<1x8x32xf32>
    tpu.vector_store %arg7[%c0_66, %c0_67, %c0_68], %171 {strides = array<i32>} : memref<2x8x32xf32, #tpu.memory_space<vmem>>, vector<1x8x32xf32>,
    %c0_69 = arith.constant 0 : index
    %c0_70 = arith.constant 0 : index
    %c0_71 = arith.constant 0 : index
    %172 = vector.load %arg8[%c0_69, %c0_70, %c0_71] : memref<2x8x32xf32, #tpu.memory_space<vmem>>, vector<1x8x32xf32>
    %173 = vector.shape_cast %172 : vector<1x8x32xf32> to vector<8x32xf32>
    %174 = vector.shape_cast %164 : vector<8x32xf32> to vector<1x8x32xf32>
    tpu.vector_store %arg8[%c0_69, %c0_70, %c0_71], %174 {strides = array<i32>} : memref<2x8x32xf32, #tpu.memory_space<vmem>>, vector<1x8x32xf32>,
    %c0_72 = arith.constant 0 : index
    %c0_73 = arith.constant 0 : index
    %175 = vector.load %arg10[%c0_72, %c0_73] : memref<64x32xf32, #tpu.memory_space<vmem>>, vector<64x32xf32>
    %c0_74 = arith.constant 0 : index
    %c0_75 = arith.constant 0 : index
    %176 = vector.load %arg4[%c0_74, %c0_75] : memref<32x128xf32, #tpu.memory_space<vmem>>, vector<32x128xf32>
    %cst_76 = arith.constant dense<0.000000e+00> : vector<64x128xf32>
    %177 = tpu.matmul %175, %176, %cst_76 {dimension_numbers = #tpu.dot_dimension_numbers<[1], [0], [0], [1], [0, 0, 1, 1], [], []>} : vector<64x32xf32>, vector<32x128xf32>, vector<64x128xf32> -> vector<64x128xf32>
    %c0_77 = arith.constant 0 : index
    %c0_78 = arith.constant 0 : index
    %178 = vector.load %arg6[%c0_77, %c0_78] : memref<1x128xf32, #tpu.memory_space<vmem>>, vector<1x128xf32>
    %179 = vector.broadcast %178 : vector<1x128xf32> to vector<64x128xf32>
    %180 = arith.addf %177, %179 : vector<64x128xf32>
    %c0_79 = arith.constant 0 : index
    %c0_80 = arith.constant 0 : index
    %181 = vector.load %arg9[%c0_79, %c0_80] : memref<64x128xf32, #tpu.memory_space<vmem>>, vector<64x128xf32>
    tpu.vector_store %arg9[%c0_79, %c0_80], %180 {strides = array<i32>} : memref<64x128xf32, #tpu.memory_space<vmem>>, vector<64x128xf32>,
    %cst_81 = arith.constant 0.000000e+00 : f32
    %182 = vector.broadcast %cst_81 : f32 to vector<8x32xf32>
    %cst_82 = arith.constant 0.000000e+00 : f32
    %183 = vector.broadcast %cst_82 : f32 to vector<8x32xf32>
    %c0_83 = arith.constant 0 : index
    %c0_84 = arith.constant 0 : index
    %184 = vector.load %arg9[%c0_83, %c0_84] : memref<64x128xf32, #tpu.memory_space<vmem>>, vector<8x128xf32>
    %c0_85 = arith.constant 0 : index
    %c0_86 = arith.constant 0 : index
    %185 = vector.load %arg5[%c0_85, %c0_86] : memref<32x128xf32, #tpu.memory_space<vmem>>, vector<32x128xf32>
    %cst_87 = arith.constant dense<0.000000e+00> : vector<8x128xf32>
    %186 = tpu.matmul %182, %185, %cst_87 {dimension_numbers = #tpu.dot_dimension_numbers<[1], [0], [0], [1], [0, 0, 1, 1], [], []>} : vector<8x32xf32>, vector<32x128xf32>, vector<8x128xf32> -> vector<8x128xf32>
    %187 = arith.addf %184, %186 : vector<8x128xf32>
    %188 = arith.negf %187 : vector<8x128xf32>
    %189 = math.exp %188 : vector<8x128xf32>
    %cst_88 = arith.constant 1.000000e+00 : f32
    %190 = vector.broadcast %cst_88 : f32 to vector<8x128xf32>
    %191 = arith.addf %190, %189 : vector<8x128xf32>
    %192 = arith.divf %190, %191 : vector<8x128xf32>
    %193 = math.tanh %187 : vector<8x128xf32>
    %194 = vector.extract_strided_slice %192 {offsets = [0, 32], sizes = [8, 32], strides = [1, 1]} : vector<8x128xf32> to vector<8x32xf32>
    %195 = arith.mulf %194, %183 : vector<8x32xf32>
    %196 = vector.extract_strided_slice %192 {offsets = [0, 0], sizes = [8, 32], strides = [1, 1]} : vector<8x128xf32> to vector<8x32xf32>
    %197 = vector.extract_strided_slice %193 {offsets = [0, 64], sizes = [8, 32], strides = [1, 1]} : vector<8x128xf32> to vector<8x32xf32>
    %198 = arith.mulf %196, %197 : vector<8x32xf32>
    %199 = arith.addf %195, %198 : vector<8x32xf32>
    %200 = vector.extract_strided_slice %192 {offsets = [0, 96], sizes = [8, 32], strides = [1, 1]} : vector<8x128xf32> to vector<8x32xf32>
    %201 = math.tanh %199 : vector<8x32xf32>
    %202 = arith.mulf %200, %201 : vector<8x32xf32>
    %c8_89 = arith.constant 8 : index
    %c0_90 = arith.constant 0 : index
    %203 = vector.load %arg9[%c8_89, %c0_90] : memref<64x128xf32, #tpu.memory_space<vmem>>, vector<8x128xf32>
    %c0_91 = arith.constant 0 : index
    %c0_92 = arith.constant 0 : index
    %204 = vector.load %arg5[%c0_91, %c0_92] : memref<32x128xf32, #tpu.memory_space<vmem>>, vector<32x128xf32>
    %cst_93 = arith.constant dense<0.000000e+00> : vector<8x128xf32>
    %205 = tpu.matmul %202, %204, %cst_93 {dimension_numbers = #tpu.dot_dimension_numbers<[1], [0], [0], [1], [0, 0, 1, 1], [], []>} : vector<8x32xf32>, vector<32x128xf32>, vector<8x128xf32> -> vector<8x128xf32>
    %206 = arith.addf %203, %205 : vector<8x128xf32>
    %207 = arith.negf %206 : vector<8x128xf32>
    %208 = math.exp %207 : vector<8x128xf32>
    %cst_94 = arith.constant 1.000000e+00 : f32
    %209 = vector.broadcast %cst_94 : f32 to vector<8x128xf32>
    %210 = arith.addf %209, %208 : vector<8x128xf32>
    %211 = arith.divf %209, %210 : vector<8x128xf32>
    %212 = math.tanh %206 : vector<8x128xf32>
    %213 = vector.extract_strided_slice %211 {offsets = [0, 32], sizes = [8, 32], strides = [1, 1]} : vector<8x128xf32> to vector<8x32xf32>
    %214 = arith.mulf %213, %199 : vector<8x32xf32>
    %215 = vector.extract_strided_slice %211 {offsets = [0, 0], sizes = [8, 32], strides = [1, 1]} : vector<8x128xf32> to vector<8x32xf32>
    %216 = vector.extract_strided_slice %212 {offsets = [0, 64], sizes = [8, 32], strides = [1, 1]} : vector<8x128xf32> to vector<8x32xf32>
    %217 = arith.mulf %215, %216 : vector<8x32xf32>
    %218 = arith.addf %214, %217 : vector<8x32xf32>
    %219 = vector.extract_strided_slice %211 {offsets = [0, 96], sizes = [8, 32], strides = [1, 1]} : vector<8x128xf32> to vector<8x32xf32>
    %220 = math.tanh %218 : vector<8x32xf32>
    %221 = arith.mulf %219, %220 : vector<8x32xf32>
    %c16_95 = arith.constant 16 : index
    %c0_96 = arith.constant 0 : index
    %222 = vector.load %arg9[%c16_95, %c0_96] : memref<64x128xf32, #tpu.memory_space<vmem>>, vector<8x128xf32>
    %c0_97 = arith.constant 0 : index
    %c0_98 = arith.constant 0 : index
    %223 = vector.load %arg5[%c0_97, %c0_98] : memref<32x128xf32, #tpu.memory_space<vmem>>, vector<32x128xf32>
    %cst_99 = arith.constant dense<0.000000e+00> : vector<8x128xf32>
    %224 = tpu.matmul %221, %223, %cst_99 {dimension_numbers = #tpu.dot_dimension_numbers<[1], [0], [0], [1], [0, 0, 1, 1], [], []>} : vector<8x32xf32>, vector<32x128xf32>, vector<8x128xf32> -> vector<8x128xf32>
    %225 = arith.addf %222, %224 : vector<8x128xf32>
    %226 = arith.negf %225 : vector<8x128xf32>
    %227 = math.exp %226 : vector<8x128xf32>
    %cst_100 = arith.constant 1.000000e+00 : f32
    %228 = vector.broadcast %cst_100 : f32 to vector<8x128xf32>
    %229 = arith.addf %228, %227 : vector<8x128xf32>
    %230 = arith.divf %228, %229 : vector<8x128xf32>
    %231 = math.tanh %225 : vector<8x128xf32>
    %232 = vector.extract_strided_slice %230 {offsets = [0, 32], sizes = [8, 32], strides = [1, 1]} : vector<8x128xf32> to vector<8x32xf32>
    %233 = arith.mulf %232, %218 : vector<8x32xf32>
    %234 = vector.extract_strided_slice %230 {offsets = [0, 0], sizes = [8, 32], strides = [1, 1]} : vector<8x128xf32> to vector<8x32xf32>
    %235 = vector.extract_strided_slice %231 {offsets = [0, 64], sizes = [8, 32], strides = [1, 1]} : vector<8x128xf32> to vector<8x32xf32>
    %236 = arith.mulf %234, %235 : vector<8x32xf32>
    %237 = arith.addf %233, %236 : vector<8x32xf32>
    %238 = vector.extract_strided_slice %230 {offsets = [0, 96], sizes = [8, 32], strides = [1, 1]} : vector<8x128xf32> to vector<8x32xf32>
    %239 = math.tanh %237 : vector<8x32xf32>
    %240 = arith.mulf %238, %239 : vector<8x32xf32>
    %c24_101 = arith.constant 24 : index
    %c0_102 = arith.constant 0 : index
    %241 = vector.load %arg9[%c24_101, %c0_102] : memref<64x128xf32, #tpu.memory_space<vmem>>, vector<8x128xf32>
    %c0_103 = arith.constant 0 : index
    %c0_104 = arith.constant 0 : index
    %242 = vector.load %arg5[%c0_103, %c0_104] : memref<32x128xf32, #tpu.memory_space<vmem>>, vector<32x128xf32>
    %cst_105 = arith.constant dense<0.000000e+00> : vector<8x128xf32>
    %243 = tpu.matmul %240, %242, %cst_105 {dimension_numbers = #tpu.dot_dimension_numbers<[1], [0], [0], [1], [0, 0, 1, 1], [], []>} : vector<8x32xf32>, vector<32x128xf32>, vector<8x128xf32> -> vector<8x128xf32>
    %244 = arith.addf %241, %243 : vector<8x128xf32>
    %245 = arith.negf %244 : vector<8x128xf32>
    %246 = math.exp %245 : vector<8x128xf32>
    %cst_106 = arith.constant 1.000000e+00 : f32
    %247 = vector.broadcast %cst_106 : f32 to vector<8x128xf32>
    %248 = arith.addf %247, %246 : vector<8x128xf32>
    %249 = arith.divf %247, %248 : vector<8x128xf32>
    %250 = math.tanh %244 : vector<8x128xf32>
    %251 = vector.extract_strided_slice %249 {offsets = [0, 32], sizes = [8, 32], strides = [1, 1]} : vector<8x128xf32> to vector<8x32xf32>
    %252 = arith.mulf %251, %237 : vector<8x32xf32>
    %253 = vector.extract_strided_slice %249 {offsets = [0, 0], sizes = [8, 32], strides = [1, 1]} : vector<8x128xf32> to vector<8x32xf32>
    %254 = vector.extract_strided_slice %250 {offsets = [0, 64], sizes = [8, 32], strides = [1, 1]} : vector<8x128xf32> to vector<8x32xf32>
    %255 = arith.mulf %253, %254 : vector<8x32xf32>
    %256 = arith.addf %252, %255 : vector<8x32xf32>
    %257 = vector.extract_strided_slice %249 {offsets = [0, 96], sizes = [8, 32], strides = [1, 1]} : vector<8x128xf32> to vector<8x32xf32>
    %258 = math.tanh %256 : vector<8x32xf32>
    %259 = arith.mulf %257, %258 : vector<8x32xf32>
    %c32_107 = arith.constant 32 : index
    %c0_108 = arith.constant 0 : index
    %260 = vector.load %arg9[%c32_107, %c0_108] : memref<64x128xf32, #tpu.memory_space<vmem>>, vector<8x128xf32>
    %c0_109 = arith.constant 0 : index
    %c0_110 = arith.constant 0 : index
    %261 = vector.load %arg5[%c0_109, %c0_110] : memref<32x128xf32, #tpu.memory_space<vmem>>, vector<32x128xf32>
    %cst_111 = arith.constant dense<0.000000e+00> : vector<8x128xf32>
    %262 = tpu.matmul %259, %261, %cst_111 {dimension_numbers = #tpu.dot_dimension_numbers<[1], [0], [0], [1], [0, 0, 1, 1], [], []>} : vector<8x32xf32>, vector<32x128xf32>, vector<8x128xf32> -> vector<8x128xf32>
    %263 = arith.addf %260, %262 : vector<8x128xf32>
    %264 = arith.negf %263 : vector<8x128xf32>
    %265 = math.exp %264 : vector<8x128xf32>
    %cst_112 = arith.constant 1.000000e+00 : f32
    %266 = vector.broadcast %cst_112 : f32 to vector<8x128xf32>
    %267 = arith.addf %266, %265 : vector<8x128xf32>
    %268 = arith.divf %266, %267 : vector<8x128xf32>
    %269 = math.tanh %263 : vector<8x128xf32>
    %270 = vector.extract_strided_slice %268 {offsets = [0, 32], sizes = [8, 32], strides = [1, 1]} : vector<8x128xf32> to vector<8x32xf32>
    %271 = arith.mulf %270, %256 : vector<8x32xf32>
    %272 = vector.extract_strided_slice %268 {offsets = [0, 0], sizes = [8, 32], strides = [1, 1]} : vector<8x128xf32> to vector<8x32xf32>
    %273 = vector.extract_strided_slice %269 {offsets = [0, 64], sizes = [8, 32], strides = [1, 1]} : vector<8x128xf32> to vector<8x32xf32>
    %274 = arith.mulf %272, %273 : vector<8x32xf32>
    %275 = arith.addf %271, %274 : vector<8x32xf32>
    %276 = vector.extract_strided_slice %268 {offsets = [0, 96], sizes = [8, 32], strides = [1, 1]} : vector<8x128xf32> to vector<8x32xf32>
    %277 = math.tanh %275 : vector<8x32xf32>
    %278 = arith.mulf %276, %277 : vector<8x32xf32>
    %c40_113 = arith.constant 40 : index
    %c0_114 = arith.constant 0 : index
    %279 = vector.load %arg9[%c40_113, %c0_114] : memref<64x128xf32, #tpu.memory_space<vmem>>, vector<8x128xf32>
    %c0_115 = arith.constant 0 : index
    %c0_116 = arith.constant 0 : index
    %280 = vector.load %arg5[%c0_115, %c0_116] : memref<32x128xf32, #tpu.memory_space<vmem>>, vector<32x128xf32>
    %cst_117 = arith.constant dense<0.000000e+00> : vector<8x128xf32>
    %281 = tpu.matmul %278, %280, %cst_117 {dimension_numbers = #tpu.dot_dimension_numbers<[1], [0], [0], [1], [0, 0, 1, 1], [], []>} : vector<8x32xf32>, vector<32x128xf32>, vector<8x128xf32> -> vector<8x128xf32>
    %282 = arith.addf %279, %281 : vector<8x128xf32>
    %283 = arith.negf %282 : vector<8x128xf32>
    %284 = math.exp %283 : vector<8x128xf32>
    %cst_118 = arith.constant 1.000000e+00 : f32
    %285 = vector.broadcast %cst_118 : f32 to vector<8x128xf32>
    %286 = arith.addf %285, %284 : vector<8x128xf32>
    %287 = arith.divf %285, %286 : vector<8x128xf32>
    %288 = math.tanh %282 : vector<8x128xf32>
    %289 = vector.extract_strided_slice %287 {offsets = [0, 32], sizes = [8, 32], strides = [1, 1]} : vector<8x128xf32> to vector<8x32xf32>
    %290 = arith.mulf %289, %275 : vector<8x32xf32>
    %291 = vector.extract_strided_slice %287 {offsets = [0, 0], sizes = [8, 32], strides = [1, 1]} : vector<8x128xf32> to vector<8x32xf32>
    %292 = vector.extract_strided_slice %288 {offsets = [0, 64], sizes = [8, 32], strides = [1, 1]} : vector<8x128xf32> to vector<8x32xf32>
    %293 = arith.mulf %291, %292 : vector<8x32xf32>
    %294 = arith.addf %290, %293 : vector<8x32xf32>
    %295 = vector.extract_strided_slice %287 {offsets = [0, 96], sizes = [8, 32], strides = [1, 1]} : vector<8x128xf32> to vector<8x32xf32>
    %296 = math.tanh %294 : vector<8x32xf32>
    %297 = arith.mulf %295, %296 : vector<8x32xf32>
    %c48_119 = arith.constant 48 : index
    %c0_120 = arith.constant 0 : index
    %298 = vector.load %arg9[%c48_119, %c0_120] : memref<64x128xf32, #tpu.memory_space<vmem>>, vector<8x128xf32>
    %c0_121 = arith.constant 0 : index
    %c0_122 = arith.constant 0 : index
    %299 = vector.load %arg5[%c0_121, %c0_122] : memref<32x128xf32, #tpu.memory_space<vmem>>, vector<32x128xf32>
    %cst_123 = arith.constant dense<0.000000e+00> : vector<8x128xf32>
    %300 = tpu.matmul %297, %299, %cst_123 {dimension_numbers = #tpu.dot_dimension_numbers<[1], [0], [0], [1], [0, 0, 1, 1], [], []>} : vector<8x32xf32>, vector<32x128xf32>, vector<8x128xf32> -> vector<8x128xf32>
    %301 = arith.addf %298, %300 : vector<8x128xf32>
    %302 = arith.negf %301 : vector<8x128xf32>
    %303 = math.exp %302 : vector<8x128xf32>
    %cst_124 = arith.constant 1.000000e+00 : f32
    %304 = vector.broadcast %cst_124 : f32 to vector<8x128xf32>
    %305 = arith.addf %304, %303 : vector<8x128xf32>
    %306 = arith.divf %304, %305 : vector<8x128xf32>
    %307 = math.tanh %301 : vector<8x128xf32>
    %308 = vector.extract_strided_slice %306 {offsets = [0, 32], sizes = [8, 32], strides = [1, 1]} : vector<8x128xf32> to vector<8x32xf32>
    %309 = arith.mulf %308, %294 : vector<8x32xf32>
    %310 = vector.extract_strided_slice %306 {offsets = [0, 0], sizes = [8, 32], strides = [1, 1]} : vector<8x128xf32> to vector<8x32xf32>
    %311 = vector.extract_strided_slice %307 {offsets = [0, 64], sizes = [8, 32], strides = [1, 1]} : vector<8x128xf32> to vector<8x32xf32>
    %312 = arith.mulf %310, %311 : vector<8x32xf32>
    %313 = arith.addf %309, %312 : vector<8x32xf32>
    %314 = vector.extract_strided_slice %306 {offsets = [0, 96], sizes = [8, 32], strides = [1, 1]} : vector<8x128xf32> to vector<8x32xf32>
    %315 = math.tanh %313 : vector<8x32xf32>
    %316 = arith.mulf %314, %315 : vector<8x32xf32>
    %c56_125 = arith.constant 56 : index
    %c0_126 = arith.constant 0 : index
    %317 = vector.load %arg9[%c56_125, %c0_126] : memref<64x128xf32, #tpu.memory_space<vmem>>, vector<8x128xf32>
    %c0_127 = arith.constant 0 : index
    %c0_128 = arith.constant 0 : index
    %318 = vector.load %arg5[%c0_127, %c0_128] : memref<32x128xf32, #tpu.memory_space<vmem>>, vector<32x128xf32>
    %cst_129 = arith.constant dense<0.000000e+00> : vector<8x128xf32>
    %319 = tpu.matmul %316, %318, %cst_129 {dimension_numbers = #tpu.dot_dimension_numbers<[1], [0], [0], [1], [0, 0, 1, 1], [], []>} : vector<8x32xf32>, vector<32x128xf32>, vector<8x128xf32> -> vector<8x128xf32>
    %320 = arith.addf %317, %319 : vector<8x128xf32>
    %321 = arith.negf %320 : vector<8x128xf32>
    %322 = math.exp %321 : vector<8x128xf32>
    %cst_130 = arith.constant 1.000000e+00 : f32
    %323 = vector.broadcast %cst_130 : f32 to vector<8x128xf32>
    %324 = arith.addf %323, %322 : vector<8x128xf32>
    %325 = arith.divf %323, %324 : vector<8x128xf32>
    %326 = math.tanh %320 : vector<8x128xf32>
    %327 = vector.extract_strided_slice %325 {offsets = [0, 32], sizes = [8, 32], strides = [1, 1]} : vector<8x128xf32> to vector<8x32xf32>
    %328 = arith.mulf %327, %313 : vector<8x32xf32>
    %329 = vector.extract_strided_slice %325 {offsets = [0, 0], sizes = [8, 32], strides = [1, 1]} : vector<8x128xf32> to vector<8x32xf32>
    %330 = vector.extract_strided_slice %326 {offsets = [0, 64], sizes = [8, 32], strides = [1, 1]} : vector<8x128xf32> to vector<8x32xf32>
    %331 = arith.mulf %329, %330 : vector<8x32xf32>
    %332 = arith.addf %328, %331 : vector<8x32xf32>
    %333 = vector.extract_strided_slice %325 {offsets = [0, 96], sizes = [8, 32], strides = [1, 1]} : vector<8x128xf32> to vector<8x32xf32>
    %334 = math.tanh %332 : vector<8x32xf32>
    %335 = arith.mulf %333, %334 : vector<8x32xf32>
    %c1 = arith.constant 1 : index
    %c0_131 = arith.constant 0 : index
    %c0_132 = arith.constant 0 : index
    %336 = vector.load %arg7[%c1, %c0_131, %c0_132] : memref<2x8x32xf32, #tpu.memory_space<vmem>>, vector<1x8x32xf32>
    %337 = vector.shape_cast %336 : vector<1x8x32xf32> to vector<8x32xf32>
    %338 = vector.shape_cast %335 : vector<8x32xf32> to vector<1x8x32xf32>
    tpu.vector_store %arg7[%c1, %c0_131, %c0_132], %338 {strides = array<i32>} : memref<2x8x32xf32, #tpu.memory_space<vmem>>, vector<1x8x32xf32>,
    %c1_133 = arith.constant 1 : index
    %c0_134 = arith.constant 0 : index
    %c0_135 = arith.constant 0 : index
    %339 = vector.load %arg8[%c1_133, %c0_134, %c0_135] : memref<2x8x32xf32, #tpu.memory_space<vmem>>, vector<1x8x32xf32>
    %340 = vector.shape_cast %339 : vector<1x8x32xf32> to vector<8x32xf32>
    %341 = vector.shape_cast %332 : vector<8x32xf32> to vector<1x8x32xf32>
    tpu.vector_store %arg8[%c1_133, %c0_134, %c0_135], %341 {strides = array<i32>} : memref<2x8x32xf32, #tpu.memory_space<vmem>>, vector<1x8x32xf32>,
    return
  }
}

</mosaic_0001>

<bundles_post_ra>
// kernel: a_call__.1
= control target key start
LH: loop header
LB: loop body
LE: loop exit
PB: predicated region body
PF: predicated region fallthrough
CT: control target
= control target key end

     0   :  { %14 = vsyncpa [#allocation5], 0  ;;  %s2116_s0 = inlined_call_operand.hbm [shape: f32[64,16], index: 0, kind: input, shape index: {}]   ;;  %s2117_s1 = inlined_call_operand.hbm [shape: f32[16,128], index: 1, kind: input, shape index: {}]   ;;  %s2118_s2 = inlined_call_operand.hbm [shape: f32[32,128], index: 2, kind: input, shape index: {}]   ;;  %s2119_s3 = inlined_call_operand.vmem [shape: f32[1,128], index: 3, kind: input, shape index: {}]   ;;  %s2120_s4 = inlined_call_operand.hbm [shape: f32[32,128], index: 4, kind: input, shape index: {}]   ;;  %s2121_s5 = inlined_call_operand.hbm [shape: f32[32,128], index: 5, kind: input, shape index: {}]   ;;  %s2122_s6 = inlined_call_operand.vmem [shape: f32[1,128], index: 6, kind: input, shape index: {}]   ;;  %s2123_s7 = inlined_call_operand.hbm [shape: f32[2,8,32], index: 7, kind: output, shape index: {0}]   ;;  %s2124_s8 = inlined_call_operand.hbm [shape: f32[2,8,32], index: 8, kind: output, shape index: {1}]  }
   0x1   :  { %15 = vsyncpa [#allocation8], 0 }
   0x2   :  { %16 = vsyncpa [#allocation11], 0 }
   0x3   :  { %17 = vsyncpa [#allocation6], 0 }
   0x4   :  { %18 = vsyncpa [#allocation15], 0  ;;  %s36_s29 = sshll.u32 %s2117_s1, 4  ;;  %s1783_s30 = smov [#allocation7]   ;;  %s37_s29 = int_to_ptr.hbm [resolvable:$true] %s36_s29 }
   0x5   :  { %s38_s9 = sshll.u32 %s1783_s30, 4  ;;  %s64_s12 = sshll.u32 %s2120_s4, 4  ;;  %s39_s9 = int_to_ptr.vmem [resolvable:$true] %s38_s9  ;;  %s65_s12 = int_to_ptr.hbm [resolvable:$true] %s64_s12 }
   0x6   :  { %s1784_s13 = smov 128   ;;  %s1785_s14 = smov 8  }
   0x7   :  { %44 = dma.hbm_to_vmem [thread:$0]  %s37_s29, 256, %s39_s9, [#allocation8], %s1784_s13, %s1784_s13, %s1785_s14  }
   0x8   :  { %s1786_s15 = smov [#allocation10]   ;;  %s23_s1 = sshll.u32 %s2116_s0, 4  ;;  %s24_s1 = int_to_ptr.hbm [resolvable:$true] %s23_s1 }
   0x9   :  { %s66_s16 = sshll.u32 %s1786_s15, 4  ;;  %s49_s20 = sshll.u32 %s2118_s2, 4  ;;  %s67_s16 = int_to_ptr.vmem [resolvable:$true] %s66_s16  ;;  %s50_s20 = int_to_ptr.hbm [resolvable:$true] %s49_s20 }
   0xa   :  { %72 = dma.hbm_to_vmem [thread:$0]  %s65_s12, 512, %s67_s16, [#allocation11], %s1784_s13, %s1784_s13, %s1785_s14  }
   0xb   :  { %s1787_s21 = smov [#allocation4]   ;;  %s1788_s23 = smov [#allocation9]  }
   0xc   :  { %s25_s22 = sshll.u32 %s1787_s21, 4  ;;  %s51_s0 = sshll.u32 %s1788_s23, 4  ;;  %s26_s22 = int_to_ptr.vmem [resolvable:$true] %s25_s22  ;;  %s52_s0 = int_to_ptr.vmem [resolvable:$true] %s51_s0 }
   0xd   :  { %31 = dma.hbm_to_vmem [thread:$0]  %s24_s1, 1024, %s26_s22, [#allocation5], %s1784_s13, %s1784_s13, %s1785_s14  }
   0xe   :  { %s77_s26 = sshll.u32 %s2121_s5, 4  ;;  %s1789_s2 = smov [#allocation12]   ;;  %s78_s26 = int_to_ptr.hbm [resolvable:$true] %s77_s26 }
   0xf   :  { %57 = dma.hbm_to_vmem [thread:$0]  %s50_s20, 512, %s52_s0, [#allocation8], %s1784_s13, %s1784_s13, %s1785_s14  }
  0x10   :  { %s79_s27 = sshll.u32 %s1789_s2, 4  ;;  %s80_s27 = int_to_ptr.vmem [resolvable:$true] %s79_s27 }
  0x11   :  { %85 = dma.hbm_to_vmem [thread:$0]  %s78_s26, 512, %s80_s27, [#allocation11], %s1784_s13, %s1784_s13, %s1785_s14  }
  0x12   :  { %1773 = dma.done.wait [#allocation5], 1024  }
  0x13   :  { %1774 = vsyncadd [#allocation5], 4294966272 }
  0x14   :  { %1775 = dma.done.wait [#allocation8], 768  }
  0x15   :  { %1776 = vsyncadd [#allocation8], 4294966528 }
  0x16   :  { %1777 = dma.done.wait [#allocation11], 1024  }
  0x17   :  { %1778 = vsyncadd [#allocation11], 4294966272  ;;  %v1871_v0 = vld [vmem:[#allocation9 + $0x18] sm:$0xff]  ;;  %v1873_v2 = vld [vmem:[#allocation9 + $0x10] sm:$0xff]  ;;  %vm122_vm0 = vcmask 130048   ;;  %v1790_v7 = vmov 0.0  }
  0x18   :  { %v117_v1 = vld [vmem:[#allocation7 + $0x8] sm:$0xff]  ;;  %217 = vmatpush.msra.mxu1 %v1871_v0  ;;  %v116_v3 = vld [vmem:[#allocation7] sm:$0xff]  ;;  %v1876_v5 = vld [vmem:[#allocation9 + $0x8] sm:$0xff]  ;;  %287 = vmatpush.msra.mxu2 %v1871_v0  ;;  %s1791_s29 = smov 64   ;;  %s1792_s30 = smov 32   ;;  %vm201_vm5 = vcmask 261120  }
  0x19   :  { %161 = vmatpush.msra.mxu0 %v117_v1  ;;  %v108_v4 = vld [vmem:[#allocation4] sm:$0xff]  ;;  %v1881_v6 = vld [vmem:[#allocation9] sm:$0xff]  ;;  %v775_v35 = vld [vmem:[#allocation10 + $0x18] sm:$0xff]  ;;  %s1794_s12 = smov [#allocation14]   ;;  %s1395_s18 = sshll.u32 %s2124_s8, 4  ;;  %s1396_s18 = int_to_ptr.hbm [resolvable:$true] %s1395_s18 }
  0x1a   :  { %218 = vmatpush.msra.mxu1 %v1873_v2  ;;  %288 = vmatpush.msra.mxu2 %v1873_v2  ;;  %v1904_v8 = vld [vmem:[%s2119_s3] ss:$0 sm:$0xff]  ;;  %v109_v37 = vld [vmem:[#allocation4 + $0x8] sm:$0xff]  ;;  %v773_v38 = vld [vmem:[#allocation10 + $0x8] sm:$0xff]  ;;  %s1393_s15 = sshll.u32 %s1794_s12, 4  ;;  %s1795_s1 = smov [#allocation13]   ;;  %s1394_s15 = int_to_ptr.vmem [resolvable:$true] %s1393_s15 }
  0x1b   :  { %162 = vmatpush.msra.mxu0 %v116_v3  ;;  %v774_v36 = vld [vmem:[#allocation10 + $0x10] sm:$0xff]  ;;  %816 = vmatpush.msra.mxu3 %v775_v35  ;;  %v772_v39 = vld [vmem:[#allocation10] sm:$0xff]  ;;  %s1380_s4 = sshll.u32 %s1795_s1, 4  ;;  %s1382_s21 = sshll.u32 %s2123_s7, 4  ;;  %s1381_s4 = int_to_ptr.vmem [resolvable:$true] %s1380_s4  ;;  %s1383_s21 = int_to_ptr.hbm [resolvable:$true] %s1382_s21 }
  0x1c   :  { %1415 = vmatmul.msk.f32.vlgmr.msra.gmra.mxu0 %vm122_vm0, %v108_v4  ;;  %219 = vmatpush.msra.mxu1 %v1876_v5  ;;  %v110_v4 = vld [vmem:[#allocation4 + $0x10] sm:$0xff] }
  0x1d   :  { %289 = vmatpush.msra.mxu2 %v1876_v5  ;;  %817 = vmatpush.msra.mxu3 %v774_v36 }
  0x1e   :  { %220 = vmatpush.msra.mxu1 %v1881_v6 }
  0x1f   :  { %221 = vmatmul.f32.vlgmr.msra.gmra.mxu1 %v1790_v7  ;;  %290 = vmatpush.msra.mxu2 %v1881_v6 }
  0x20   :  { %357 = vmatpush.msrb.mxu1 %v1871_v0  ;;  %818 = vmatpush.msra.mxu3 %v773_v38 }
  0x21   :  { %497 = vmatpush.msrb.mxu2 %v1871_v0 }
  0x22   :  { %358 = vmatpush.msrb.mxu1 %v1873_v2  ;;  %819 = vmatpush.msra.mxu3 %v772_v39 }
  0x23   :  { %498 = vmatpush.msrb.mxu2 %v1873_v2 }
  0x24   :  { %359 = vmatpush.msrb.mxu1 %v1876_v5  ;;  %1416 = vmatmul.msk.f32.gmra.mxu0 %vm122_vm0, %v109_v37  ;;  %v111_v37 = vld [vmem:[#allocation4 + $0x18] sm:$0xff] }
  0x25   :  { %499 = vmatpush.msrb.mxu2 %v1876_v5 }
  0x26   :  { %360 = vmatpush.msrb.mxu1 %v1881_v6 }
  0x27   :  { %500 = vmatpush.msrb.mxu2 %v1881_v6 }
  0x28   :  { %427 = vmatpush.msra.mxu1 %v1871_v0 }
  0x2a   :  { %428 = vmatpush.msra.mxu1 %v1873_v2 }
  0x2c   :  { %429 = vmatpush.msra.mxu1 %v1876_v5  ;;  %1417 = vmatmul.msk.f32.gmra.mxu0 %vm122_vm0, %v110_v4 }
  0x2e   :  { %430 = vmatpush.msra.mxu1 %v1881_v6 }
  0x34   :  { %1418 = vmatmul.msk.f32.gmra.mxu0 %vm122_vm0, %v111_v37 }
  0x99   :  { %v164_v9 = vpop.f32.mrf.mxu0 }
  0x9a   :  { %v165_v10 = vadd.f32 %v1904_v8, %v164_v9 }
  0x9c   :  { %v222_v11 = vpop.f32.mrf.mxu1 }
  0x9d   :  { %v225_v12 = vadd.f32 %v222_v11, %v165_v10 }
  0x9f   :  { %1476 = vtanh.f32 %v225_v12  ;;  %v1423_v14 = vmul.f32 -1.442695, %v225_v12 }
  0xa1   :  { %1478 = vpow2.f32 %v1423_v14  ;;  %v167_v42 = vpop.f32.mrf.mxu0 }
  0xa2   :  { %v168_v43 = vadd.f32 %v1904_v8, %v167_v42 }
  0xa5   :  { %v1477_v13 = vpop.eup %1476 }
  0xa6   :  { %248 = vrot.lane.b32.xlu0 %v1477_v13, %s1791_s29 }
  0xa7   :  { %v1479_v15 = vpop.eup %1478 }
  0xa8   :  { %v229_v16 = vadd.f32 1.0, %v1479_v15 }
  0xa9   :  { %v170_v13 = vpop.f32.mrf.mxu0 }
  0xaa   :  { %1480 = vrcp.f32 %v229_v16  ;;  %v241_v22 = vand.u32 2147483648, %v229_v16  ;;  %vm235_vm2 = vweird.f32 %v229_v16  ;;  %v239_v23 = vand.u32 2147483647, %v229_v16 }
  0xab   :  { %v171_v14 = vadd.f32 %v1904_v8, %v170_v13 }
  0xac   :  { %v242_v25 = vor.u32 1.1754944e-38, %v241_v22  ;;  %vm240_vm4 = vcmp.eq.f32.partialorder %v239_v23, 8.507059e+37 }
  0xb0   :  { %v1481_v17 = vpop.eup %1480 }
  0xb1   :  { %v231_v18 = vmul.f32 %v1481_v17, %v229_v16  ;;  %vm236_vm1 = vweird.f32 %v1481_v17  ;;  %v173_v42 = vpop.f32.mrf.mxu0 }
  0xb2   :  { %vm237_vm3 = vmor %vm235_vm2, %vm236_vm1 }
  0xb3   :  { %v232_v19 = vsub.f32 1.0, %v231_v18 }
  0xb5   :  { %v233_v20 = vmul.f32 %v1481_v17, %v232_v19 }
  0xb7   :  { %v234_v21 = vadd.f32 %v1481_v17, %v233_v20 }
  0xb9   :  { %v238_v24 = vsel %vm237_vm3, %v1481_v17, %v234_v21 }
  0xba   :  { %v243_v27 = vsel %vm240_vm4, %v242_v25, %v238_v24 }
  0xbb   :  { %v246_v29 = vmul.f32 0.0, %v243_v27 }
 0x118   :  { %v249_v26 = vpop.permute.xlu0 %248 }
 0x119   :  { %v251_v28 = vmul.f32 %v249_v26, %v243_v27 }
 0x11b   :  { %253 = vrot.lane.b32.xlu0 %v251_v28, %s1792_s30 }
 0x18d   :  { %v254_v30 = vpop.permute.xlu0 %253 }
 0x18e   :  { %v256_v31 = vadd.f32 %v254_v30, %v246_v29 }
 0x190   :  { %1482 = vtanh.f32 %v256_v31 }
 0x196   :  { %v1483_v32 = vpop.eup %1482 }
 0x197   :  { %259 = vrot.lane.b32.xlu1 %v1483_v32, %s1791_s29 }
 0x209   :  { %v260_v33 = vpop.permute.xlu1 %259 }
 0x20a   :  { %v262_v34 = vmul.f32 %v260_v33, %v243_v27 }
 0x20c   :  { %264 = vrot.lane.b32.xlu1 %v262_v34, %s1792_s30 }
 0x27e   :  { %v265_v40 = vpop.permute.xlu1 %264 }
 0x27f   :  { %267 = vst.msk [vmem:[#allocation3] sm:$0xff] %vm201_vm5, %v265_v40  ;;  %1424 = vmatmul.msk.f32.vlgmr.msra.gmra.mxu2 %vm201_vm5, %v265_v40 }
 0x280   :  { %567 = vmatpush.msra.mxu2 %v1871_v0 }
 0x282   :  { %568 = vmatpush.msra.mxu2 %v1873_v2 }
 0x284   :  { %569 = vmatpush.msra.mxu2 %v1876_v5 }
 0x286   :  { %v764_v41 = vld [vmem:[#allocation3] sm:$0xff]  ;;  %570 = vmatpush.msra.mxu2 %v1881_v6 }
 0x287   :  { %1438 = vmatmul.msk.f32.vlgmr.msra.gmra.mxu3 %vm201_vm5, %v764_v41 }
 0x302   :  { %v292_v44 = vpop.f32.mrf.mxu2 }
 0x303   :  { %v295_v45 = vadd.f32 %v292_v44, %v168_v43  ;;  %v174_v43 = vadd.f32 %v1904_v8, %v173_v42 }
 0x305   :  { %1484 = vtanh.f32 %v295_v45  ;;  %v1425_v47 = vmul.f32 -1.442695, %v295_v45 }
 0x307   :  { %1486 = vpow2.f32 %v1425_v47 }
 0x30b   :  { %v1485_v46 = vpop.eup %1484 }
 0x30c   :  { %318 = vrot.lane.b32.xlu2 %v1485_v46, %s1791_s29 }
 0x30d   :  { %v1487_v48 = vpop.eup %1486 }
 0x30e   :  { %v299_v49 = vadd.f32 1.0, %v1487_v48 }
 0x310   :  { %1488 = vrcp.f32 %v299_v49  ;;  %v311_v55 = vand.u32 2147483648, %v299_v49  ;;  %vm305_vm7 = vweird.f32 %v299_v49  ;;  %v309_v56 = vand.u32 2147483647, %v299_v49 }
 0x312   :  { %v312_v58 = vor.u32 1.1754944e-38, %v311_v55  ;;  %vm310_vm9 = vcmp.eq.f32.partialorder %v309_v56, 8.507059e+37 }
 0x316   :  { %v1489_v50 = vpop.eup %1488 }
 0x317   :  { %v301_v51 = vmul.f32 %v1489_v50, %v299_v49  ;;  %vm306_vm6 = vweird.f32 %v1489_v50 }
 0x318   :  { %vm307_vm8 = vmor %vm305_vm7, %vm306_vm6 }
 0x319   :  { %v302_v52 = vsub.f32 1.0, %v301_v51 }
 0x31b   :  { %v303_v53 = vmul.f32 %v1489_v50, %v302_v52 }
 0x31d   :  { %v304_v54 = vadd.f32 %v1489_v50, %v303_v53 }
 0x31f   :  { %v308_v57 = vsel %vm307_vm8, %v1489_v50, %v304_v54 }
 0x320   :  { %v313_v60 = vsel %vm310_vm9, %v312_v58, %v308_v57 }
 0x321   :  { %v316_v62 = vmul.f32 %v313_v60, %v256_v31 }
 0x366   :  { %v319_v59 = vpop.permute.xlu2 %318 }
 0x367   :  { %v321_v61 = vmul.f32 %v319_v59, %v313_v60 }
 0x369   :  { %323 = vrot.lane.b32.xlu2 %v321_v61, %s1792_s30 }
 0x3c3   :  { %v324_v63 = vpop.permute.xlu2 %323 }
 0x3c4   :  { %v326_v1 = vadd.f32 %v324_v63, %v316_v62 }
 0x3c6   :  { %1490 = vtanh.f32 %v326_v1 }
 0x3cc   :  { %v1491_v3 = vpop.eup %1490 }
 0x3cd   :  { %329 = vrot.lane.b32.xlu0 %v1491_v3, %s1791_s29 }
 0x43f   :  { %v330_v9 = vpop.permute.xlu0 %329 }
 0x440   :  { %v332_v10 = vmul.f32 %v330_v9, %v313_v60 }
 0x442   :  { %334 = vrot.lane.b32.xlu1 %v332_v10, %s1792_s30  ;;  %v112_v10 = vld [vmem:[#allocation4 + $0x20] sm:$0xff] }
 0x443   :  { %1419 = vmatmul.msk.f32.gmra.mxu0 %vm122_vm0, %v112_v10  ;;  %v1982_v10 = vld [vmem:[#allocation12] sm:$0xff] }
 0x4b4   :  { %v335_v11 = vpop.permute.xlu1 %334 }
 0x4b5   :  { %337 = vst.msk [vmem:[#allocation3 + $0x8] sm:$0xff] %vm201_vm5, %v335_v11  ;;  %1426 = vmatmul.msk.f32.vlgmr.msrb.gmra.mxu1 %vm201_vm5, %v335_v11 }
 0x4b6   :  { %637 = vmatpush.msrb.mxu1 %v1871_v0 }
 0x4b8   :  { %638 = vmatpush.msrb.mxu1 %v1873_v2 }
 0x4ba   :  { %639 = vmatpush.msrb.mxu1 %v1876_v5 }
 0x4bc   :  { %v765_v12 = vld [vmem:[#allocation3 + $0x8] sm:$0xff]  ;;  %640 = vmatpush.msrb.mxu1 %v1881_v6 }
 0x4bd   :  { %1439 = vmatmul.msk.f32.gmra.mxu3 %vm201_vm5, %v765_v12 }
 0x4c0   :  { %v176_v13 = vpop.f32.mrf.mxu0 }
 0x532   :  { %v362_v15 = vpop.f32.mrf.mxu1 }
 0x533   :  { %v365_v16 = vadd.f32 %v362_v15, %v171_v14  ;;  %v177_v14 = vadd.f32 %v1904_v8, %v176_v13 }
 0x535   :  { %1492 = vtanh.f32 %v365_v16  ;;  %v1427_v18 = vmul.f32 -1.442695, %v365_v16 }
 0x537   :  { %1494 = vpow2.f32 %v1427_v18 }
 0x53b   :  { %v1493_v17 = vpop.eup %1492 }
 0x53c   :  { %388 = vrot.lane.b32.xlu2 %v1493_v17, %s1791_s29 }
 0x53d   :  { %v1495_v19 = vpop.eup %1494 }
 0x53e   :  { %v369_v20 = vadd.f32 1.0, %v1495_v19 }
 0x540   :  { %1496 = vrcp.f32 %v369_v20  ;;  %v381_v26 = vand.u32 2147483648, %v369_v20  ;;  %vm375_vm11 = vweird.f32 %v369_v20  ;;  %v379_v27 = vand.u32 2147483647, %v369_v20 }
 0x542   :  { %v382_v29 = vor.u32 1.1754944e-38, %v381_v26  ;;  %vm380_vm13 = vcmp.eq.f32.partialorder %v379_v27, 8.507059e+37 }
 0x546   :  { %v1497_v21 = vpop.eup %1496 }
 0x547   :  { %v371_v22 = vmul.f32 %v1497_v21, %v369_v20  ;;  %vm376_vm10 = vweird.f32 %v1497_v21 }
 0x548   :  { %vm377_vm12 = vmor %vm375_vm11, %vm376_vm10 }
 0x549   :  { %v372_v23 = vsub.f32 1.0, %v371_v22 }
 0x54b   :  { %v373_v24 = vmul.f32 %v1497_v21, %v372_v23 }
 0x54d   :  { %v374_v25 = vadd.f32 %v1497_v21, %v373_v24 }
 0x54f   :  { %v378_v28 = vsel %vm377_vm12, %v1497_v21, %v374_v25 }
 0x550   :  { %v383_v31 = vsel %vm380_vm13, %v382_v29, %v378_v28 }
 0x551   :  { %v386_v33 = vmul.f32 %v383_v31, %v326_v1 }
 0x596   :  { %v389_v30 = vpop.permute.xlu2 %388 }
 0x597   :  { %v391_v32 = vmul.f32 %v389_v30, %v383_v31 }
 0x599   :  { %393 = vrot.lane.b32.xlu0 %v391_v32, %s1792_s30 }
 0x60b   :  { %v394_v34 = vpop.permute.xlu0 %393 }
 0x60c   :  { %v396_v35 = vadd.f32 %v394_v34, %v386_v33 }
 0x60e   :  { %1498 = vtanh.f32 %v396_v35 }
 0x614   :  { %v1499_v36 = vpop.eup %1498 }
 0x615   :  { %399 = vrot.lane.b32.xlu1 %v1499_v36, %s1791_s29 }
 0x687   :  { %v400_v38 = vpop.permute.xlu1 %399 }
 0x688   :  { %v402_v39 = vmul.f32 %v400_v38, %v383_v31 }
 0x68a   :  { %404 = vrot.lane.b32.xlu2 %v402_v39, %s1792_s30 }
 0x6e4   :  { %v405_v40 = vpop.permute.xlu2 %404 }
 0x6e5   :  { %407 = vst.msk [vmem:[#allocation3 + $0x10] sm:$0xff] %vm201_vm5, %v405_v40  ;;  %1428 = vmatmul.msk.f32.vlgmr.msra.gmra.mxu1 %vm201_vm5, %v405_v40 }
 0x6ec   :  { %v766_v41 = vld [vmem:[#allocation3 + $0x10] sm:$0xff] }
 0x6ed   :  { %1440 = vmatmul.msk.f32.gmra.mxu3 %vm201_vm5, %v766_v41 }
 0x762   :  { %v432_v44 = vpop.f32.mrf.mxu1 }
 0x763   :  { %v435_v45 = vadd.f32 %v432_v44, %v174_v43 }
 0x765   :  { %1500 = vtanh.f32 %v435_v45  ;;  %v1429_v47 = vmul.f32 -1.442695, %v435_v45 }
 0x767   :  { %1502 = vpow2.f32 %v1429_v47 }
 0x76b   :  { %v1501_v46 = vpop.eup %1500 }
 0x76c   :  { %458 = vrot.lane.b32.xlu0 %v1501_v46, %s1791_s29 }
 0x76d   :  { %v1503_v48 = vpop.eup %1502 }
 0x76e   :  { %v439_v49 = vadd.f32 1.0, %v1503_v48 }
 0x770   :  { %1504 = vrcp.f32 %v439_v49  ;;  %v451_v55 = vand.u32 2147483648, %v439_v49  ;;  %vm445_vm15 = vweird.f32 %v439_v49  ;;  %v449_v56 = vand.u32 2147483647, %v439_v49 }
 0x772   :  { %v452_v58 = vor.u32 1.1754944e-38, %v451_v55  ;;  %vm450_vm2 = vcmp.eq.f32.partialorder %v449_v56, 8.507059e+37 }
 0x776   :  { %v1505_v50 = vpop.eup %1504 }
 0x777   :  { %v441_v51 = vmul.f32 %v1505_v50, %v439_v49  ;;  %vm446_vm14 = vweird.f32 %v1505_v50 }
 0x778   :  { %vm447_vm1 = vmor %vm445_vm15, %vm446_vm14 }
 0x779   :  { %v442_v52 = vsub.f32 1.0, %v441_v51 }
 0x77b   :  { %v443_v53 = vmul.f32 %v1505_v50, %v442_v52 }
 0x77d   :  { %v444_v54 = vadd.f32 %v1505_v50, %v443_v53 }
 0x77f   :  { %v448_v57 = vsel %vm447_vm1, %v1505_v50, %v444_v54 }
 0x780   :  { %v453_v60 = vsel %vm450_vm2, %v452_v58, %v448_v57 }
 0x781   :  { %v456_v62 = vmul.f32 %v453_v60, %v396_v35  ;;  %v113_v35 = vld [vmem:[#allocation4 + $0x28] sm:$0xff] }
 0x782   :  { %1420 = vmatmul.msk.f32.gmra.mxu0 %vm122_vm0, %v113_v35 }
 0x7de   :  { %v459_v59 = vpop.permute.xlu0 %458 }
 0x7df   :  { %v461_v61 = vmul.f32 %v459_v59, %v453_v60 }
 0x7e1   :  { %463 = vrot.lane.b32.xlu1 %v461_v61, %s1792_s30 }
 0x7ff   :  { %v179_v38 = vpop.f32.mrf.mxu0 }
 0x800   :  { %v180_v39 = vadd.f32 %v1904_v8, %v179_v38 }
 0x853   :  { %v464_v63 = vpop.permute.xlu1 %463 }
 0x854   :  { %v466_v1 = vadd.f32 %v464_v63, %v456_v62  ;;  %v114_v62 = vld [vmem:[#allocation4 + $0x30] sm:$0xff] }
 0x855   :  { %1421 = vmatmul.msk.f32.gmra.mxu0 %vm122_vm0, %v114_v62 }
 0x856   :  { %1506 = vtanh.f32 %v466_v1 }
 0x85c   :  { %v1507_v3 = vpop.eup %1506 }
 0x85d   :  { %469 = vrot.lane.b32.xlu2 %v1507_v3, %s1791_s29  ;;  %v1972_v3 = vld [vmem:[#allocation12 + $0x18] sm:$0xff] }
 0x85e   :  { %870 = vmatpush.msra.mxu1 %v1972_v3 }
 0x8b7   :  { %v470_v4 = vpop.permute.xlu2 %469 }
 0x8b8   :  { %v472_v9 = vmul.f32 %v470_v4, %v453_v60  ;;  %v1974_v4 = vld [vmem:[#allocation12 + $0x10] sm:$0xff] }
 0x8b9   :  { %871 = vmatpush.msra.mxu1 %v1974_v4 }
 0x8ba   :  { %474 = vrot.lane.b32.xlu0 %v472_v9, %s1792_s30  ;;  %v1978_v9 = vld [vmem:[#allocation12 + $0x8] sm:$0xff] }
 0x8bb   :  { %872 = vmatpush.msra.mxu1 %v1978_v9 }
 0x8bd   :  { %873 = vmatpush.msra.mxu1 %v1982_v10 }
 0x8d2   :  { %v182_v13 = vpop.f32.mrf.mxu0 }
 0x92c   :  { %v475_v11 = vpop.permute.xlu0 %474 }
 0x92d   :  { %477 = vst.msk [vmem:[#allocation3 + $0x18] sm:$0xff] %vm201_vm5, %v475_v11  ;;  %1430 = vmatmul.msk.f32.vlgmr.msrb.gmra.mxu2 %vm201_vm5, %v475_v11 }
 0x92e   :  { %707 = vmatpush.msrb.mxu2 %v1871_v0 }
 0x930   :  { %708 = vmatpush.msrb.mxu2 %v1873_v2 }
 0x932   :  { %709 = vmatpush.msrb.mxu2 %v1876_v5 }
 0x934   :  { %v767_v12 = vld [vmem:[#allocation3 + $0x18] sm:$0xff]  ;;  %710 = vmatpush.msrb.mxu2 %v1881_v6 }
 0x935   :  { %1441 = vmatmul.msk.f32.gmra.mxu3 %vm201_vm5, %v767_v12 }
 0x9b0   :  { %v502_v15 = vpop.f32.mrf.mxu2 }
 0x9b1   :  { %v505_v16 = vadd.f32 %v502_v15, %v177_v14  ;;  %v183_v14 = vadd.f32 %v1904_v8, %v182_v13 }
 0x9b3   :  { %1508 = vtanh.f32 %v505_v16  ;;  %v1431_v18 = vmul.f32 -1.442695, %v505_v16 }
 0x9b5   :  { %1510 = vpow2.f32 %v1431_v18 }
 0x9b9   :  { %v1509_v17 = vpop.eup %1508 }
 0x9ba   :  { %528 = vrot.lane.b32.xlu1 %v1509_v17, %s1791_s29  ;;  %v2004_v17 = vld [vmem:[%s2122_s6] ss:$0 sm:$0xff] }
 0x9bb   :  { %v1511_v0 = vpop.eup %1510 }
 0x9bc   :  { %v509_v2 = vadd.f32 1.0, %v1511_v0 }
 0x9be   :  { %1512 = vrcp.f32 %v509_v2  ;;  %v521_v22 = vand.u32 2147483648, %v509_v2  ;;  %vm515_vm4 = vweird.f32 %v509_v2  ;;  %v519_v23 = vand.u32 2147483647, %v509_v2 }
 0x9c0   :  { %v522_v25 = vor.u32 1.1754944e-38, %v521_v22  ;;  %vm520_vm7 = vcmp.eq.f32.partialorder %v519_v23, 8.507059e+37 }
 0x9c4   :  { %v1513_v5 = vpop.eup %1512 }
 0x9c5   :  { %v511_v19 = vmul.f32 %v1513_v5, %v509_v2  ;;  %vm516_vm3 = vweird.f32 %v1513_v5 }
 0x9c6   :  { %vm517_vm6 = vmor %vm515_vm4, %vm516_vm3 }
 0x9c7   :  { %v512_v20 = vsub.f32 1.0, %v511_v19 }
 0x9c9   :  { %v513_v6 = vmul.f32 %v1513_v5, %v512_v20 }
 0x9cb   :  { %v514_v21 = vadd.f32 %v1513_v5, %v513_v6 }
 0x9cd   :  { %v518_v24 = vsel %vm517_vm6, %v1513_v5, %v514_v21 }
 0x9ce   :  { %v523_v27 = vsel %vm520_vm7, %v522_v25, %v518_v24 }
 0x9cf   :  { %v526_v29 = vmul.f32 %v523_v27, %v466_v1 }
 0xa2c   :  { %v529_v26 = vpop.permute.xlu1 %528 }
 0xa2d   :  { %v531_v28 = vmul.f32 %v529_v26, %v523_v27 }
 0xa2f   :  { %533 = vrot.lane.b32.xlu2 %v531_v28, %s1792_s30 }
 0xa89   :  { %v534_v30 = vpop.permute.xlu2 %533 }
 0xa8a   :  { %v536_v31 = vadd.f32 %v534_v30, %v526_v29 }
 0xa8c   :  { %1514 = vtanh.f32 %v536_v31 }
 0xa92   :  { %v1515_v32 = vpop.eup %1514 }
 0xa93   :  { %539 = vrot.lane.b32.xlu0 %v1515_v32, %s1791_s29 }
 0xb05   :  { %v540_v33 = vpop.permute.xlu0 %539 }
 0xb06   :  { %v542_v34 = vmul.f32 %v540_v33, %v523_v27 }
 0xb08   :  { %544 = vrot.lane.b32.xlu1 %v542_v34, %s1792_s30 }
 0xb7a   :  { %v545_v36 = vpop.permute.xlu1 %544 }
 0xb7b   :  { %547 = vst.msk [vmem:[#allocation3 + $0x20] sm:$0xff] %vm201_vm5, %v545_v36  ;;  %1432 = vmatmul.msk.f32.vlgmr.msra.gmra.mxu2 %vm201_vm5, %v545_v36 }
 0xb7c   :  { %934 = vmatpush.msra.mxu2 %v1972_v3 }
 0xb7e   :  { %935 = vmatpush.msra.mxu2 %v1974_v4 }
 0xb80   :  { %936 = vmatpush.msra.mxu2 %v1978_v9 }
 0xb82   :  { %v768_v37 = vld [vmem:[#allocation3 + $0x20] sm:$0xff]  ;;  %937 = vmatpush.msra.mxu2 %v1982_v10 }
 0xb83   :  { %1442 = vmatmul.msk.f32.gmra.mxu3 %vm201_vm5, %v768_v37 }
 0xbfe   :  { %v572_v40 = vpop.f32.mrf.mxu2 }
 0xbff   :  { %v575_v41 = vadd.f32 %v572_v40, %v180_v39 }
 0xc01   :  { %1516 = vtanh.f32 %v575_v41  ;;  %v1433_v43 = vmul.f32 -1.442695, %v575_v41 }
 0xc03   :  { %1518 = vpow2.f32 %v1433_v43 }
 0xc07   :  { %v1517_v42 = vpop.eup %1516 }
 0xc08   :  { %598 = vrot.lane.b32.xlu2 %v1517_v42, %s1791_s29 }
 0xc09   :  { %v1519_v44 = vpop.eup %1518 }
 0xc0a   :  { %v579_v45 = vadd.f32 1.0, %v1519_v44 }
 0xc0c   :  { %1520 = vrcp.f32 %v579_v45  ;;  %v591_v51 = vand.u32 2147483648, %v579_v45  ;;  %vm585_vm9 = vweird.f32 %v579_v45  ;;  %v589_v52 = vand.u32 2147483647, %v579_v45 }
 0xc0e   :  { %v592_v54 = vor.u32 1.1754944e-38, %v591_v51  ;;  %vm590_vm11 = vcmp.eq.f32.partialorder %v589_v52, 8.507059e+37 }
 0xc12   :  { %v1521_v46 = vpop.eup %1520 }
 0xc13   :  { %v581_v47 = vmul.f32 %v1521_v46, %v579_v45  ;;  %vm586_vm8 = vweird.f32 %v1521_v46 }
 0xc14   :  { %vm587_vm10 = vmor %vm585_vm9, %vm586_vm8 }
 0xc15   :  { %v582_v48 = vsub.f32 1.0, %v581_v47 }
 0xc17   :  { %v583_v49 = vmul.f32 %v1521_v46, %v582_v48 }
 0xc19   :  { %v584_v50 = vadd.f32 %v1521_v46, %v583_v49 }
 0xc1b   :  { %v588_v53 = vsel %vm587_vm10, %v1521_v46, %v584_v50 }
 0xc1c   :  { %v593_v56 = vsel %vm590_vm11, %v592_v54, %v588_v53 }
 0xc1d   :  { %v596_v58 = vmul.f32 %v593_v56, %v536_v31 }
 0xc62   :  { %v599_v55 = vpop.permute.xlu2 %598 }
 0xc63   :  { %v601_v57 = vmul.f32 %v599_v55, %v593_v56 }
 0xc65   :  { %603 = vrot.lane.b32.xlu0 %v601_v57, %s1792_s30 }
 0xcd7   :  { %v604_v59 = vpop.permute.xlu0 %603 }
 0xcd8   :  { %v1966_v60 = vadd.f32 %v604_v59, %v596_v58 }
 0xcda   :  { %1522 = vtanh.f32 %v1966_v60 }
 0xce0   :  { %v1523_v61 = vpop.eup %1522 }
 0xce1   :  { %609 = vrot.lane.b32.xlu1 %v1523_v61, %s1791_s29 }
 0xd53   :  { %v610_v63 = vpop.permute.xlu1 %609 }
 0xd54   :  { %v612_v1 = vmul.f32 %v610_v63, %v593_v56 }
 0xd56   :  { %614 = vrot.lane.b32.xlu2 %v612_v1, %s1792_s30 }
 0xdb0   :  { %v615_v11 = vpop.permute.xlu2 %614 }
 0xdb1   :  { %617 = vst.msk [vmem:[#allocation3 + $0x28] sm:$0xff] %vm201_vm5, %v615_v11  ;;  %1434 = vmatmul.msk.f32.vlgmr.msrb.gmra.mxu1 %vm201_vm5, %v615_v11 }
 0xdb2   :  { %998 = vmatpush.msrb.mxu1 %v1972_v3 }
 0xdb4   :  { %999 = vmatpush.msrb.mxu1 %v1974_v4 }
 0xdb6   :  { %1000 = vmatpush.msrb.mxu1 %v1978_v9 }
 0xdb8   :  { %v769_v12 = vld [vmem:[#allocation3 + $0x28] sm:$0xff]  ;;  %1001 = vmatpush.msrb.mxu1 %v1982_v10 }
 0xdb9   :  { %1443 = vmatmul.msk.f32.gmra.mxu3 %vm201_vm5, %v769_v12  ;;  %874 = vmatmul.f32.vlgmr.msra.gmra.mxu1 %v1790_v7  ;;  %v821_v7 = vpop.f32.mrf.mxu3 }
 0xdba   :  { %1126 = vmatpush.msra.mxu1 %v1972_v3  ;;  %v822_v18 = vadd.f32 %v2004_v17, %v821_v7 }
 0xdbc   :  { %1127 = vmatpush.msra.mxu1 %v1974_v4 }
 0xdbe   :  { %1128 = vmatpush.msra.mxu1 %v1978_v9 }
 0xdc0   :  { %1129 = vmatpush.msra.mxu1 %v1982_v10 }
 0xdc1   :  { %v824_v11 = vpop.f32.mrf.mxu3 }
 0xdc2   :  { %v825_v12 = vadd.f32 %v2004_v17, %v824_v11 }
 0xe2e   :  { %v642_v15 = vpop.f32.mrf.mxu1 }
 0xe2f   :  { %v645_v16 = vadd.f32 %v642_v15, %v183_v14 }
 0xe31   :  { %1524 = vtanh.f32 %v645_v16  ;;  %v1435_v8 = vmul.f32 -1.442695, %v645_v16 }
 0xe36   :  { %v875_v0 = vpop.f32.mrf.mxu1 }
 0xe37   :  { %v1525_v2 = vpop.eup %1524  ;;  %v878_v5 = vadd.f32 %v875_v0, %v822_v18 }
 0xe38   :  { %668 = vrot.lane.b32.xlu0 %v1525_v2, %s1791_s29 }
 0xe39   :  { %1526 = vtanh.f32 %v878_v5  ;;  %v1446_v20 = vmul.f32 -1.442695, %v878_v5 }
 0xe3a   :  { %1528 = vpow2.f32 %v1435_v8 }
 0xe3b   :  { %1530 = vpow2.f32 %v1446_v20 }
 0xe3f   :  { %v1527_v19 = vpop.eup %1526 }
 0xe40   :  { %901 = vrot.lane.b32.xlu1 %v1527_v19, %s1791_s29  ;;  %v1529_v6 = vpop.eup %1528 }
 0xe41   :  { %v649_v21 = vadd.f32 1.0, %v1529_v6  ;;  %v1531_v22 = vpop.eup %1530 }
 0xe42   :  { %v882_v23 = vadd.f32 1.0, %v1531_v22 }
 0xe43   :  { %1532 = vrcp.f32 %v649_v21  ;;  %v661_v32 = vand.u32 2147483648, %v649_v21  ;;  %vm655_vm13 = vweird.f32 %v649_v21  ;;  %v659_v33 = vand.u32 2147483647, %v649_v21 }
 0xe44   :  { %1534 = vrcp.f32 %v882_v23  ;;  %v894_v41 = vand.u32 2147483648, %v882_v23  ;;  %vm888_vm2 = vweird.f32 %v882_v23  ;;  %v892_v42 = vand.u32 2147483647, %v882_v23 }
 0xe45   :  { %v662_v36 = vor.u32 1.1754944e-38, %v661_v32  ;;  %vm660_vm15 = vcmp.eq.f32.partialorder %v659_v33, 8.507059e+37  ;;  %v827_v33 = vpop.f32.mrf.mxu3 }
 0xe46   :  { %v895_v44 = vor.u32 1.1754944e-38, %v894_v41  ;;  %vm893_vm4 = vcmp.eq.f32.partialorder %v892_v42, 8.507059e+37 }
 0xe49   :  { %v1533_v24 = vpop.eup %1532 }
 0xe4a   :  { %v651_v25 = vmul.f32 %v1533_v24, %v649_v21  ;;  %v1535_v27 = vpop.eup %1534  ;;  %vm656_vm12 = vweird.f32 %v1533_v24 }
 0xe4b   :  { %v884_v29 = vmul.f32 %v1535_v27, %v882_v23  ;;  %vm657_vm14 = vmor %vm655_vm13, %vm656_vm12  ;;  %vm889_vm1 = vweird.f32 %v1535_v27 }
 0xe4c   :  { %v652_v26 = vsub.f32 1.0, %v651_v25  ;;  %vm890_vm3 = vmor %vm888_vm2, %vm889_vm1 }
 0xe4d   :  { %v885_v31 = vsub.f32 1.0, %v884_v29 }
 0xe4e   :  { %v653_v28 = vmul.f32 %v1533_v24, %v652_v26 }
 0xe4f   :  { %v886_v35 = vmul.f32 %v1535_v27, %v885_v31 }
 0xe50   :  { %v654_v30 = vadd.f32 %v1533_v24, %v653_v28 }
 0xe51   :  { %v887_v40 = vadd.f32 %v1535_v27, %v886_v35 }
 0xe52   :  { %v658_v34 = vsel %vm657_vm14, %v1533_v24, %v654_v30 }
 0xe53   :  { %v663_v38 = vsel %vm660_vm15, %v662_v36, %v658_v34  ;;  %v891_v43 = vsel %vm890_vm3, %v1535_v27, %v887_v40  ;;  %v828_v34 = vadd.f32 %v2004_v17, %v827_v33 }
 0xe54   :  { %v896_v46 = vsel %vm893_vm4, %v895_v44, %v891_v43  ;;  %v666_v48 = vmul.f32 %v663_v38, %v1966_v60  ;;  %v115_v60 = vld [vmem:[#allocation4 + $0x38] sm:$0xff] }
 0xe55   :  { %v899_v52 = vmul.f32 0.0, %v896_v46  ;;  %1422 = vmatmul.msk.f32.gmra.mxu0 %vm122_vm0, %v115_v60 }
 0xeaa   :  { %v669_v37 = vpop.permute.xlu0 %668 }
 0xeab   :  { %v671_v39 = vmul.f32 %v669_v37, %v663_v38 }
 0xead   :  { %673 = vrot.lane.b32.xlu2 %v671_v39, %s1792_s30 }
 0xeb2   :  { %v902_v45 = vpop.permute.xlu1 %901 }
 0xeb3   :  { %v904_v47 = vmul.f32 %v902_v45, %v896_v46 }
 0xeb5   :  { %906 = vrot.lane.b32.xlu0 %v904_v47, %s1792_s30 }
 0xf07   :  { %v674_v49 = vpop.permute.xlu2 %673 }
 0xf08   :  { %v2012_v50 = vadd.f32 %v674_v49, %v666_v48 }
 0xf0a   :  { %1536 = vtanh.f32 %v2012_v50 }
 0xf10   :  { %v1537_v51 = vpop.eup %1536 }
 0xf11   :  { %679 = vrot.lane.b32.xlu1 %v1537_v51, %s1791_s29 }
 0xf27   :  { %v907_v53 = vpop.permute.xlu0 %906 }
 0xf28   :  { %v909_v54 = vadd.f32 %v907_v53, %v899_v52 }
 0xf2a   :  { %1538 = vtanh.f32 %v909_v54 }
 0xf30   :  { %v1539_v55 = vpop.eup %1538 }
 0xf31   :  { %912 = vrot.lane.b32.xlu2 %v1539_v55, %s1791_s29 }
 0xf83   :  { %v680_v56 = vpop.permute.xlu1 %679 }
 0xf84   :  { %v682_v57 = vmul.f32 %v680_v56, %v663_v38 }
 0xf86   :  { %684 = vrot.lane.b32.xlu0 %v682_v57, %s1792_s30 }
 0xf8b   :  { %v913_v58 = vpop.permute.xlu2 %912 }
 0xf8c   :  { %v915_v59 = vmul.f32 %v913_v58, %v896_v46 }
 0xf8e   :  { %918 = vrot.lane.b32.xlu1 %v915_v59, %s1792_s30 }
 0xff8   :  { %v685_v61 = vpop.permute.xlu0 %684 }
 0xff9   :  { %687 = vst.msk [vmem:[#allocation3 + $0x30] sm:$0xff] %vm201_vm5, %v685_v61  ;;  %1436 = vmatmul.msk.f32.vlgmr.msrb.gmra.mxu2 %vm201_vm5, %v685_v61  ;;  %v830_v61 = vpop.f32.mrf.mxu3 }
 0xffa   :  { %1062 = vmatpush.msrb.mxu2 %v1972_v3 }
 0xffc   :  { %1063 = vmatpush.msrb.mxu2 %v1974_v4 }
 0xffe   :  { %1064 = vmatpush.msrb.mxu2 %v1978_v9 }
0x1000   :  { %v919_v62 = vpop.permute.xlu1 %918  ;;  %v770_v63 = vld [vmem:[#allocation3 + $0x30] sm:$0xff]  ;;  %1065 = vmatpush.msrb.mxu2 %v1982_v10 }
0x1001   :  { %1444 = vmatmul.msk.f32.gmra.mxu3 %vm201_vm5, %v770_v63  ;;  %1447 = vmatmul.msk.f32.vlgmr.msra.gmra.mxu2 %vm201_vm5, %v919_v62  ;;  %v831_v62 = vadd.f32 %v2004_v17, %v830_v61 }
0x1002   :  { %1190 = vmatpush.msra.mxu2 %v1972_v3 }
0x1004   :  { %1191 = vmatpush.msra.mxu2 %v1974_v4 }
0x1006   :  { %1192 = vmatpush.msra.mxu2 %v1978_v9 }
0x1008   :  { %1193 = vmatpush.msra.mxu2 %v1982_v10 }
0x107c   :  { %v2032_v1 = vpop.f32.mrf.mxu2 }
0x1084   :  { %v939_v13 = vpop.f32.mrf.mxu2 }
0x1085   :  { %v942_v14 = vadd.f32 %v939_v13, %v825_v12 }
0x1087   :  { %1540 = vtanh.f32 %v942_v14  ;;  %v1448_v16 = vmul.f32 -1.442695, %v942_v14 }
0x1089   :  { %1542 = vpow2.f32 %v1448_v16 }
0x108d   :  { %v1541_v15 = vpop.eup %1540 }
0x108e   :  { %965 = vrot.lane.b32.xlu2 %v1541_v15, %s1791_s29 }
0x108f   :  { %v1543_v7 = vpop.eup %1542 }
0x1090   :  { %v946_v18 = vadd.f32 1.0, %v1543_v7 }
0x1092   :  { %1544 = vrcp.f32 %v946_v18  ;;  %v958_v20 = vand.u32 2147483648, %v946_v18  ;;  %vm952_vm6 = vweird.f32 %v946_v18  ;;  %v956_v6 = vand.u32 2147483647, %v946_v18 }
0x1094   :  { %v959_v22 = vor.u32 1.1754944e-38, %v958_v20  ;;  %vm957_vm8 = vcmp.eq.f32.partialorder %v956_v6, 8.507059e+37 }
0x1098   :  { %v1545_v0 = vpop.eup %1544 }
0x1099   :  { %v948_v2 = vmul.f32 %v1545_v0, %v946_v18  ;;  %vm953_vm0 = vweird.f32 %v1545_v0 }
0x109a   :  { %vm954_vm7 = vmor %vm952_vm6, %vm953_vm0 }
0x109b   :  { %v949_v5 = vsub.f32 1.0, %v948_v2 }
0x109d   :  { %v950_v19 = vmul.f32 %v1545_v0, %v949_v5 }
0x109f   :  { %v951_v8 = vadd.f32 %v1545_v0, %v950_v19 }
0x10a1   :  { %v955_v21 = vsel %vm954_vm7, %v1545_v0, %v951_v8 }
0x10a2   :  { %v960_v24 = vsel %vm957_vm8, %v959_v22, %v955_v21 }
0x10a3   :  { %v963_v26 = vmul.f32 %v960_v24, %v909_v54 }
0x10e8   :  { %v966_v23 = vpop.permute.xlu2 %965 }
0x10e9   :  { %v968_v25 = vmul.f32 %v966_v23, %v960_v24 }
0x10eb   :  { %970 = vrot.lane.b32.xlu0 %v968_v25, %s1792_s30 }
0x115d   :  { %v971_v27 = vpop.permute.xlu0 %970 }
0x115e   :  { %v973_v28 = vadd.f32 %v971_v27, %v963_v26  ;;  %v833_v26 = vpop.f32.mrf.mxu3 }
0x115f   :  { %v834_v27 = vadd.f32 %v2004_v17, %v833_v26 }
0x1160   :  { %1546 = vtanh.f32 %v973_v28 }
0x1166   :  { %v1547_v29 = vpop.eup %1546 }
0x1167   :  { %976 = vrot.lane.b32.xlu1 %v1547_v29, %s1791_s29 }
0x11d9   :  { %v977_v30 = vpop.permute.xlu1 %976 }
0x11da   :  { %v979_v31 = vmul.f32 %v977_v30, %v960_v24 }
0x11dc   :  { %982 = vrot.lane.b32.xlu2 %v979_v31, %s1792_s30 }
0x1236   :  { %v983_v32 = vpop.permute.xlu2 %982 }
0x1237   :  { %1449 = vmatmul.msk.f32.vlgmr.msrb.gmra.mxu1 %vm201_vm5, %v983_v32 }
0x1238   :  { %1254 = vmatpush.msrb.mxu1 %v1972_v3 }
0x123a   :  { %1255 = vmatpush.msrb.mxu1 %v1974_v4 }
0x123c   :  { %1256 = vmatpush.msrb.mxu1 %v1978_v9 }
0x123e   :  { %1257 = vmatpush.msrb.mxu1 %v1982_v10 }
0x12b4   :  { %v1003_v35 = vpop.f32.mrf.mxu1 }
0x12b5   :  { %v1006_v36 = vadd.f32 %v1003_v35, %v828_v34 }
0x12b7   :  { %1548 = vtanh.f32 %v1006_v36  ;;  %v1450_v38 = vmul.f32 -1.442695, %v1006_v36 }
0x12b9   :  { %1550 = vpow2.f32 %v1450_v38 }
0x12bd   :  { %v1549_v37 = vpop.eup %1548 }
0x12be   :  { %1029 = vrot.lane.b32.xlu0 %v1549_v37, %s1791_s29 }
0x12bf   :  { %v1551_v39 = vpop.eup %1550 }
0x12c0   :  { %v1010_v40 = vadd.f32 1.0, %v1551_v39 }
0x12c2   :  { %1552 = vrcp.f32 %v1010_v40  ;;  %v1022_v46 = vand.u32 2147483648, %v1010_v40  ;;  %vm1016_vm10 = vweird.f32 %v1010_v40  ;;  %v1020_v47 = vand.u32 2147483647, %v1010_v40 }
0x12c4   :  { %v1023_v49 = vor.u32 1.1754944e-38, %v1022_v46  ;;  %vm1021_vm12 = vcmp.eq.f32.partialorder %v1020_v47, 8.507059e+37 }
0x12c8   :  { %v1553_v41 = vpop.eup %1552 }
0x12c9   :  { %v1012_v42 = vmul.f32 %v1553_v41, %v1010_v40  ;;  %vm1017_vm9 = vweird.f32 %v1553_v41 }
0x12ca   :  { %vm1018_vm11 = vmor %vm1016_vm10, %vm1017_vm9 }
0x12cb   :  { %v1013_v43 = vsub.f32 1.0, %v1012_v42 }
0x12cd   :  { %v1014_v44 = vmul.f32 %v1553_v41, %v1013_v43 }
0x12cf   :  { %v1015_v45 = vadd.f32 %v1553_v41, %v1014_v44 }
0x12d1   :  { %v1019_v48 = vsel %vm1018_vm11, %v1553_v41, %v1015_v45 }
0x12d2   :  { %v1024_v52 = vsel %vm1021_vm12, %v1023_v49, %v1019_v48 }
0x12d3   :  { %v1027_v54 = vmul.f32 %v1024_v52, %v973_v28 }
0x1330   :  { %v1030_v51 = vpop.permute.xlu0 %1029 }
0x1331   :  { %v1032_v53 = vmul.f32 %v1030_v51, %v1024_v52 }
0x1333   :  { %1034 = vrot.lane.b32.xlu1 %v1032_v53, %s1792_s30 }
0x13a5   :  { %v1035_v55 = vpop.permute.xlu1 %1034 }
0x13a6   :  { %v1037_v56 = vadd.f32 %v1035_v55, %v1027_v54  ;;  %v836_v54 = vpop.f32.mrf.mxu3 }
0x13a7   :  { %v837_v55 = vadd.f32 %v2004_v17, %v836_v54 }
0x13a8   :  { %1554 = vtanh.f32 %v1037_v56 }
0x13ae   :  { %v1555_v57 = vpop.eup %1554 }
0x13af   :  { %1040 = vrot.lane.b32.xlu2 %v1555_v57, %s1791_s29 }
0x1409   :  { %v1041_v58 = vpop.permute.xlu2 %1040 }
0x140a   :  { %v1043_v59 = vmul.f32 %v1041_v58, %v1024_v52 }
0x140c   :  { %1046 = vrot.lane.b32.xlu0 %v1043_v59, %s1792_s30 }
0x147e   :  { %v1047_v60 = vpop.permute.xlu0 %1046 }
0x147f   :  { %1451 = vmatmul.msk.f32.vlgmr.msrb.gmra.mxu2 %vm201_vm5, %v1047_v60 }
0x1480   :  { %1318 = vmatpush.msrb.mxu2 %v1972_v3 }
0x1482   :  { %1319 = vmatpush.msrb.mxu2 %v1974_v4 }
0x1484   :  { %1320 = vmatpush.msrb.mxu2 %v1978_v9 }
0x1486   :  { %1321 = vmatpush.msrb.mxu2 %v1982_v10 }
0x1502   :  { %v1067_v63 = vpop.f32.mrf.mxu2 }
0x1503   :  { %v1070_v11 = vadd.f32 %v1067_v63, %v831_v62 }
0x1505   :  { %1556 = vtanh.f32 %v1070_v11  ;;  %v1452_v13 = vmul.f32 -1.442695, %v1070_v11 }
0x1507   :  { %1558 = vpow2.f32 %v1452_v13  ;;  %v185_v13 = vpop.f32.mrf.mxu0 }
0x150b   :  { %v1557_v12 = vpop.eup %1556 }
0x150c   :  { %1093 = vrot.lane.b32.xlu1 %v1557_v12, %s1791_s29 }
0x150d   :  { %v1559_v14 = vpop.eup %1558 }
0x150e   :  { %v1074_v15 = vadd.f32 1.0, %v1559_v14 }
0x1510   :  { %1560 = vrcp.f32 %v1074_v15  ;;  %v1086_v10 = vand.u32 2147483648, %v1074_v15  ;;  %vm1080_vm14 = vweird.f32 %v1074_v15  ;;  %v1084_v18 = vand.u32 2147483647, %v1074_v15 }
0x1512   :  { %v1087_v2 = vor.u32 1.1754944e-38, %v1086_v10  ;;  %vm1085_vm1 = vcmp.eq.f32.partialorder %v1084_v18, 8.507059e+37 }
0x1516   :  { %v1561_v3 = vpop.eup %1560 }
0x1517   :  { %v1076_v4 = vmul.f32 %v1561_v3, %v1074_v15  ;;  %vm1081_vm13 = vweird.f32 %v1561_v3 }
0x1518   :  { %vm1082_vm15 = vmor %vm1080_vm14, %vm1081_vm13 }
0x1519   :  { %v1077_v16 = vsub.f32 1.0, %v1076_v4  ;;  %v1604_v4 = vld [vmem:[%s2119_s3] ss:$0 sm:$0xff]  ;;  %s1793_s3 = smov 96  }
0x151b   :  { %v1078_v9 = vmul.f32 %v1561_v3, %v1077_v16  ;;  %v186_v16 = vadd.f32 %v1604_v4, %v185_v13 }
0x151d   :  { %v1079_v7 = vadd.f32 %v1561_v3, %v1078_v9  ;;  %v715_v10 = vadd.f32 %v2032_v1, %v186_v16 }
0x151f   :  { %v1083_v0 = vsel %vm1082_vm15, %v1561_v3, %v1079_v7 }
0x1520   :  { %v1088_v19 = vsel %vm1085_vm1, %v1087_v2, %v1083_v0 }
0x1521   :  { %v1091_v20 = vmul.f32 %v1088_v19, %v1037_v56 }
0x157e   :  { %v1094_v5 = vpop.permute.xlu1 %1093 }
0x157f   :  { %v1096_v8 = vmul.f32 %v1094_v5, %v1088_v19 }
0x1581   :  { %1098 = vrot.lane.b32.xlu2 %v1096_v8, %s1792_s30 }
0x15db   :  { %v1099_v6 = vpop.permute.xlu2 %1098 }
0x15dc   :  { %v1101_v21 = vadd.f32 %v1099_v6, %v1091_v20 }
0x15de   :  { %1562 = vtanh.f32 %v1101_v21 }
0x15e4   :  { %v1563_v22 = vpop.eup %1562 }
0x15e5   :  { %1104 = vrot.lane.b32.xlu0 %v1563_v22, %s1791_s29 }
0x1657   :  { %v1105_v23 = vpop.permute.xlu0 %1104 }
0x1658   :  { %v1107_v24 = vmul.f32 %v1105_v23, %v1088_v19 }
0x165a   :  { %1110 = vrot.lane.b32.xlu1 %v1107_v24, %s1792_s30 }
0x16cc   :  { %v1111_v25 = vpop.permute.xlu1 %1110 }
0x16cd   :  { %1453 = vmatmul.msk.f32.vlgmr.msra.gmra.mxu1 %vm201_vm5, %v1111_v25 }
0x174a   :  { %v1131_v28 = vpop.f32.mrf.mxu1 }
0x174b   :  { %v1134_v29 = vadd.f32 %v1131_v28, %v834_v27 }
0x174d   :  { %1564 = vtanh.f32 %v1134_v29  ;;  %v1454_v31 = vmul.f32 -1.442695, %v1134_v29 }
0x174f   :  { %1566 = vpow2.f32 %v1454_v31 }
0x1753   :  { %v1565_v30 = vpop.eup %1564 }
0x1754   :  { %1157 = vrot.lane.b32.xlu2 %v1565_v30, %s1791_s29 }
0x1755   :  { %v1567_v32 = vpop.eup %1566 }
0x1756   :  { %v1138_v33 = vadd.f32 1.0, %v1567_v32 }
0x1758   :  { %1568 = vrcp.f32 %v1138_v33  ;;  %v1150_v39 = vand.u32 2147483648, %v1138_v33  ;;  %vm1144_vm3 = vweird.f32 %v1138_v33  ;;  %v1148_v40 = vand.u32 2147483647, %v1138_v33 }
0x175a   :  { %v1151_v42 = vor.u32 1.1754944e-38, %v1150_v39  ;;  %vm1149_vm0 = vcmp.eq.f32.partialorder %v1148_v40, 8.507059e+37 }
0x175e   :  { %v1569_v34 = vpop.eup %1568 }
0x175f   :  { %v1140_v35 = vmul.f32 %v1569_v34, %v1138_v33  ;;  %vm1145_vm2 = vweird.f32 %v1569_v34 }
0x1760   :  { %vm1146_vm4 = vmor %vm1144_vm3, %vm1145_vm2 }
0x1761   :  { %v1141_v36 = vsub.f32 1.0, %v1140_v35 }
0x1763   :  { %v1142_v37 = vmul.f32 %v1569_v34, %v1141_v36 }
0x1765   :  { %v1143_v38 = vadd.f32 %v1569_v34, %v1142_v37 }
0x1767   :  { %v1147_v41 = vsel %vm1146_vm4, %v1569_v34, %v1143_v38  ;;  %v839_v38 = vpop.f32.mrf.mxu3 }
0x1768   :  { %v1152_v44 = vsel %vm1149_vm0, %v1151_v42, %v1147_v41  ;;  %v840_v39 = vadd.f32 %v2004_v17, %v839_v38 }
0x1769   :  { %v1155_v46 = vmul.f32 %v1152_v44, %v1101_v21  ;;  %v1437_v21 = vmul.f32 -1.442695, %v715_v10 }
0x17ae   :  { %v1158_v43 = vpop.permute.xlu2 %1157 }
0x17af   :  { %v1160_v45 = vmul.f32 %v1158_v43, %v1152_v44 }
0x17b1   :  { %1162 = vrot.lane.b32.xlu0 %v1160_v45, %s1792_s30 }
0x1823   :  { %v1163_v47 = vpop.permute.xlu0 %1162 }
0x1824   :  { %v1165_v48 = vadd.f32 %v1163_v47, %v1155_v46 }
0x1826   :  { %1570 = vtanh.f32 %v1165_v48 }
0x182c   :  { %v1571_v49 = vpop.eup %1570 }
0x182d   :  { %1168 = vrot.lane.b32.xlu1 %v1571_v49, %s1791_s29 }
0x189f   :  { %v1169_v51 = vpop.permute.xlu1 %1168 }
0x18a0   :  { %v1171_v52 = vmul.f32 %v1169_v51, %v1152_v44 }
0x18a2   :  { %1174 = vrot.lane.b32.xlu2 %v1171_v52, %s1792_s30 }
0x18fc   :  { %v1175_v53 = vpop.permute.xlu2 %1174 }
0x18fd   :  { %1455 = vmatmul.msk.f32.vlgmr.msra.gmra.mxu2 %vm201_vm5, %v1175_v53 }
0x1980   :  { %v1195_v56 = vpop.f32.mrf.mxu2 }
0x1981   :  { %v1198_v57 = vadd.f32 %v1195_v56, %v837_v55 }
0x1983   :  { %1572 = vtanh.f32 %v1198_v57  ;;  %v1456_v59 = vmul.f32 -1.442695, %v1198_v57 }
0x1985   :  { %1574 = vpow2.f32 %v1456_v59 }
0x1989   :  { %v1573_v58 = vpop.eup %1572 }
0x198a   :  { %1221 = vrot.lane.b32.xlu0 %v1573_v58, %s1791_s29 }
0x198b   :  { %v1575_v60 = vpop.eup %1574 }
0x198c   :  { %v1202_v61 = vadd.f32 1.0, %v1575_v60 }
0x198e   :  { %1576 = vrcp.f32 %v1202_v61  ;;  %v1214_v15 = vand.u32 2147483648, %v1202_v61  ;;  %vm1208_vm7 = vweird.f32 %v1202_v61  ;;  %v1212_v3 = vand.u32 2147483647, %v1202_v61 }
0x198f   :  { %1578 = vtanh.f32 %v715_v10 }
0x1990   :  { %v1215_v7 = vor.u32 1.1754944e-38, %v1214_v15  ;;  %vm1213_vm9 = vcmp.eq.f32.partialorder %v1212_v3, 8.507059e+37 }
0x1994   :  { %v1577_v62 = vpop.eup %1576 }
0x1995   :  { %v1204_v63 = vmul.f32 %v1577_v62, %v1202_v61  ;;  %vm1209_vm6 = vweird.f32 %v1577_v62  ;;  %v1579_v5 = vpop.eup %1578 }
0x1996   :  { %vm1210_vm8 = vmor %vm1208_vm7, %vm1209_vm6 }
0x1997   :  { %v1205_v11 = vsub.f32 1.0, %v1204_v63 }
0x1999   :  { %v1206_v12 = vmul.f32 %v1577_v62, %v1205_v11 }
0x199b   :  { %v1207_v14 = vadd.f32 %v1577_v62, %v1206_v12 }
0x199d   :  { %v1211_v9 = vsel %vm1210_vm8, %v1577_v62, %v1207_v14 }
0x199e   :  { %v1216_v0 = vsel %vm1213_vm9, %v1215_v7, %v1211_v9 }
0x199f   :  { %v1219_v19 = vmul.f32 %v1216_v0, %v1165_v48 }
0x19fc   :  { %v1222_v18 = vpop.permute.xlu0 %1221 }
0x19fd   :  { %v1224_v2 = vmul.f32 %v1222_v18, %v1216_v0 }
0x19ff   :  { %1226 = vrot.lane.b32.xlu1 %v1224_v2, %s1792_s30 }
0x1a07   :  { %738 = vrot.lane.b32.xlu1 %v1579_v5, %s1791_s29 }
0x1a71   :  { %v1227_v8 = vpop.permute.xlu1 %1226 }
0x1a72   :  { %v2074_v20 = vadd.f32 %v1227_v8, %v1219_v19 }
0x1a74   :  { %1580 = vtanh.f32 %v2074_v20 }
0x1a75   :  { %1582 = vpow2.f32 %v1437_v21 }
0x1a79   :  { %v739_v34 = vpop.permute.xlu1 %738 }
0x1a7a   :  { %v1581_v6 = vpop.eup %1580 }
0x1a7b   :  { %1232 = vrot.lane.b32.xlu2 %v1581_v6, %s1791_s29  ;;  %v1583_v1 = vpop.eup %1582 }
0x1a7c   :  { %v719_v22 = vadd.f32 1.0, %v1583_v1 }
0x1a7e   :  { %1584 = vrcp.f32 %v719_v22  ;;  %v731_v30 = vand.u32 2147483648, %v719_v22  ;;  %vm725_vm11 = vweird.f32 %v719_v22  ;;  %v729_v31 = vand.u32 2147483647, %v719_v22 }
0x1a80   :  { %v732_v33 = vor.u32 1.1754944e-38, %v731_v30  ;;  %vm730_vm13 = vcmp.eq.f32.partialorder %v729_v31, 8.507059e+37 }
0x1a84   :  { %v1585_v23 = vpop.eup %1584 }
0x1a85   :  { %v721_v24 = vmul.f32 %v1585_v23, %v719_v22  ;;  %vm726_vm10 = vweird.f32 %v1585_v23 }
0x1a86   :  { %vm727_vm12 = vmor %vm725_vm11, %vm726_vm10 }
0x1a87   :  { %v722_v25 = vsub.f32 1.0, %v721_v24 }
0x1a89   :  { %v723_v26 = vmul.f32 %v1585_v23, %v722_v25 }
0x1a8b   :  { %v724_v28 = vadd.f32 %v1585_v23, %v723_v26 }
0x1a8d   :  { %v728_v32 = vsel %vm727_vm12, %v1585_v23, %v724_v28 }
0x1a8e   :  { %v733_v35 = vsel %vm730_vm13, %v732_v33, %v728_v32 }
0x1a8f   :  { %v741_v36 = vmul.f32 %v739_v34, %v733_v35  ;;  %v736_v43 = vmul.f32 %v733_v35, %v2012_v50 }
0x1ad5   :  { %v1233_v27 = vpop.permute.xlu2 %1232 }
0x1ad6   :  { %v1235_v29 = vmul.f32 %v1233_v27, %v1216_v0 }
0x1ad8   :  { %1238 = vrot.lane.b32.xlu0 %v1235_v29, %s1792_s30 }
0x1ae0   :  { %743 = vrot.lane.b32.xlu0 %v741_v36, %s1792_s30 }
0x1b4a   :  { %v1239_v37 = vpop.permute.xlu0 %1238 }
0x1b4b   :  { %1457 = vmatmul.msk.f32.vlgmr.msrb.gmra.mxu1 %vm201_vm5, %v1239_v37 }
0x1b52   :  { %v744_v42 = vpop.permute.xlu0 %743 }
0x1b53   :  { %v746_v44 = vadd.f32 %v744_v42, %v736_v43 }
0x1bc8   :  { %v1259_v40 = vpop.f32.mrf.mxu1 }
0x1bc9   :  { %v1262_v41 = vadd.f32 %v1259_v40, %v840_v39 }
0x1bcb   :  { %1586 = vtanh.f32 %v1262_v41  ;;  %v1458_v47 = vmul.f32 -1.442695, %v1262_v41 }
0x1bcc   :  { %1588 = vtanh.f32 %v746_v44 }
0x1bcd   :  { %1590 = vpow2.f32 %v1458_v47 }
0x1bd1   :  { %v1587_v45 = vpop.eup %1586 }
0x1bd2   :  { %1285 = vrot.lane.b32.xlu2 %v1587_v45, %s1791_s29  ;;  %v1589_v46 = vpop.eup %1588 }
0x1bd3   :  { %v1591_v48 = vpop.eup %1590 }
0x1bd4   :  { %v1266_v49 = vadd.f32 1.0, %v1591_v48 }
0x1bd6   :  { %1592 = vrcp.f32 %v1266_v49  ;;  %v1278_v50 = vand.u32 2147483648, %v1266_v49  ;;  %vm1272_vm15 = vweird.f32 %v1266_v49  ;;  %v1276_v56 = vand.u32 2147483647, %v1266_v49 }
0x1bd8   :  { %v1279_v58 = vor.u32 1.1754944e-38, %v1278_v50  ;;  %vm1277_vm2 = vcmp.eq.f32.partialorder %v1276_v56, 8.507059e+37 }
0x1bda   :  { %749 = vrot.lane.b32.xlu2 %v1589_v46, %s1791_s29 }
0x1bdc   :  { %v1593_v51 = vpop.eup %1592 }
0x1bdd   :  { %v1268_v52 = vmul.f32 %v1593_v51, %v1266_v49  ;;  %vm1273_vm14 = vweird.f32 %v1593_v51 }
0x1bde   :  { %vm1274_vm1 = vmor %vm1272_vm15, %vm1273_vm14 }
0x1bdf   :  { %v1269_v53 = vsub.f32 1.0, %v1268_v52 }
0x1be1   :  { %v1270_v54 = vmul.f32 %v1593_v51, %v1269_v53 }
0x1be3   :  { %v1271_v55 = vadd.f32 %v1593_v51, %v1270_v54 }
0x1be5   :  { %v1275_v57 = vsel %vm1274_vm1, %v1593_v51, %v1271_v55 }
0x1be6   :  { %v1280_v60 = vsel %vm1277_vm2, %v1279_v58, %v1275_v57 }
0x1be7   :  { %v1283_v11 = vmul.f32 %v1280_v60, %v2074_v20 }
0x1c2c   :  { %v1286_v59 = vpop.permute.xlu2 %1285 }
0x1c2d   :  { %v1288_v61 = vmul.f32 %v1286_v59, %v1280_v60 }
0x1c2f   :  { %1290 = vrot.lane.b32.xlu1 %v1288_v61, %s1792_s30 }
0x1c34   :  { %v750_v62 = vpop.permute.xlu2 %749 }
0x1c35   :  { %v752_v63 = vmul.f32 %v750_v62, %v733_v35 }
0x1c37   :  { %754 = vrot.lane.b32.xlu1 %v752_v63, %s1792_s30 }
0x1ca1   :  { %v1291_v12 = vpop.permute.xlu1 %1290 }
0x1ca2   :  { %v1293_v13 = vadd.f32 %v1291_v12, %v1283_v11 }
0x1ca4   :  { %1594 = vtanh.f32 %v1293_v13 }
0x1ca9   :  { %v755_v14 = vpop.permute.xlu1 %754 }
0x1caa   :  { %v1595_v15 = vpop.eup %1594  ;;  %757 = vst.msk [vmem:[#allocation3 + $0x38] sm:$0xff] %vm201_vm5, %v755_v14 }
0x1cab   :  { %758 = vst.msk [vmem:[#allocation13] sm:$0xff] %vm201_vm5, %v755_v14  ;;  %1296 = vrot.lane.b32.xlu0 %v1595_v15, %s1791_s29 }
0x1cb1   :  { %v771_v3 = vld [vmem:[#allocation3 + $0x38] sm:$0xff] }
0x1cb2   :  { %1445 = vmatmul.msk.f32.gmra.mxu3 %vm201_vm5, %v771_v3 }
0x1d1d   :  { %v1297_v4 = vpop.permute.xlu0 %1296 }
0x1d1e   :  { %v1299_v16 = vmul.f32 %v1297_v4, %v1280_v60 }
0x1d20   :  { %1302 = vrot.lane.b32.xlu2 %v1299_v16, %s1792_s30 }
0x1d35   :  { %v842_v7 = vpop.f32.mrf.mxu3 }
0x1d36   :  { %v843_v10 = vadd.f32 %v2004_v17, %v842_v7 }
0x1d7a   :  { %v1303_v9 = vpop.permute.xlu2 %1302 }
0x1d7b   :  { %1459 = vmatmul.msk.f32.vlgmr.msrb.gmra.mxu2 %vm201_vm5, %v1303_v9 }
0x1dfe   :  { %v1323_v18 = vpop.f32.mrf.mxu2 }
0x1dff   :  { %v1326_v0 = vadd.f32 %v1323_v18, %v843_v10 }
0x1e01   :  { %1596 = vtanh.f32 %v1326_v0  ;;  %v1460_v5 = vmul.f32 -1.442695, %v1326_v0 }
0x1e03   :  { %1598 = vpow2.f32 %v1460_v5 }
0x1e07   :  { %v1597_v2 = vpop.eup %1596 }
0x1e08   :  { %1349 = vrot.lane.b32.xlu0 %v1597_v2, %s1791_s29 }
0x1e09   :  { %v1599_v19 = vpop.eup %1598 }
0x1e0a   :  { %v1330_v8 = vadd.f32 1.0, %v1599_v19 }
0x1e0c   :  { %1600 = vrcp.f32 %v1330_v8  ;;  %v1342_v17 = vand.u32 2147483648, %v1330_v8  ;;  %vm1336_vm4 = vweird.f32 %v1330_v8  ;;  %v1340_v23 = vand.u32 2147483647, %v1330_v8 }
0x1e0e   :  { %v1343_v25 = vor.u32 1.1754944e-38, %v1342_v17  ;;  %vm1341_vm6 = vcmp.eq.f32.partialorder %v1340_v23, 8.507059e+37 }
0x1e10   :  { %760 = vrot.lane.b32.xlu0 %v746_v44, %s1793_s3 }
0x1e12   :  { %v1601_v20 = vpop.eup %1600 }
0x1e13   :  { %v1332_v6 = vmul.f32 %v1601_v20, %v1330_v8  ;;  %vm1337_vm3 = vweird.f32 %v1601_v20 }
0x1e14   :  { %vm1338_vm0 = vmor %vm1336_vm4, %vm1337_vm3 }
0x1e15   :  { %v1333_v21 = vsub.f32 1.0, %v1332_v6 }
0x1e17   :  { %v1334_v1 = vmul.f32 %v1601_v20, %v1333_v21 }
0x1e19   :  { %v1335_v22 = vadd.f32 %v1601_v20, %v1334_v1 }
0x1e1b   :  { %v1339_v24 = vsel %vm1338_vm0, %v1601_v20, %v1335_v22 }
0x1e1c   :  { %v1344_v27 = vsel %vm1341_vm6, %v1343_v25, %v1339_v24 }
0x1e1d   :  { %v1347_v30 = vmul.f32 %v1344_v27, %v1293_v13 }
0x1e7a   :  { %v1350_v26 = vpop.permute.xlu0 %1349 }
0x1e7b   :  { %v1352_v28 = vmul.f32 %v1350_v26, %v1344_v27 }
0x1e7d   :  { %1354 = vrot.lane.b32.xlu1 %v1352_v28, %s1792_s30 }
0x1e82   :  { %v761_v29 = vpop.permute.xlu0 %760 }
0x1e83   :  { %763 = vst.msk [vmem:[#allocation14] sm:$0xff] %vm201_vm5, %v761_v29 }
0x1eef   :  { %v1355_v31 = vpop.permute.xlu1 %1354 }
0x1ef0   :  { %v1357_v32 = vadd.f32 %v1355_v31, %v1347_v30 }
0x1ef2   :  { %1602 = vtanh.f32 %v1357_v32 }
0x1ef8   :  { %v1603_v33 = vpop.eup %1602 }
0x1ef9   :  { %1360 = vrot.lane.b32.xlu2 %v1603_v33, %s1791_s29 }
0x1f01   :  { %1371 = vrot.lane.b32.xlu2 %v1357_v32, %s1793_s3 }
0x1f53   :  { %v1361_v34 = vpop.permute.xlu2 %1360 }
0x1f54   :  { %v1363_v35 = vmul.f32 %v1361_v34, %v1344_v27 }
0x1f56   :  { %1365 = vrot.lane.b32.xlu1 %v1363_v35, %s1792_s30 }
0x1f5b   :  { %v1372_v36 = vpop.permute.xlu2 %1371 }
0x1f5c   :  { %1375 = vst.msk [vmem:[#allocation14 + $0x8] sm:$0xff] %vm201_vm5, %v1372_v36 }
0x1f5d   :  { %1401 = dma.vmem_to_hbm [thread:$0]  %s1394_s15, 256, %s1396_s18, [#allocation15], %s1784_s13, %s1784_s13, %s1785_s14  }
0x1fc8   :  { %v1366_v37 = vpop.permute.xlu1 %1365 }
0x1fc9   :  { %1369 = vst.msk [vmem:[#allocation13 + $0x8] sm:$0xff] %vm201_vm5, %v1366_v37 }
0x1fca   :  { %1388 = dma.vmem_to_hbm [thread:$0]  %s1381_s4, 256, %s1383_s21, [#allocation6], %s1784_s13, %s1784_s13, %s1785_s14  }
0x1fcb   :  { %1779 = dma.done.wait [#allocation6], 256  }
0x1fcc   :  { %1780 = vsyncadd [#allocation6], 4294967040 }
0x1fcd   :  { %1781 = dma.done.wait [#allocation15], 256  }
0x1fce   :  { %1782 = vsyncadd [#allocation15], 4294967040 }
0x1fcf   :  { %1410 = vsyncpa [#allocation5], 1 }
0x1fd0   :  { %1411 = vsyncpa [#allocation8], 1 }
0x1fd1   :  { %1412 = vsyncpa [#allocation11], 1 }
0x1fd2   :  { %1413 = vsyncpa [#allocation6], 1 }
0x1fd3   :  { %1414 = vsyncpa [#allocation15], 1 }

</bundles_post_ra>
